<compile_context>
chip_gen: v7x
topology: tpu7x:2x2x1
jax: 0.10.0
libtpu: 0.0.40
codegen_flags: <defaults>
</compile_context>

<pallas_src>
import math
import jax
import jax.numpy as jnp
from jax import lax
from jax.experimental import pallas as pl
from jax.experimental.pallas import tpu as pltpu

# ---- Small-ViT config (shrunk from vit-base-patch16-224: 768->32 hidden, 12->2 layers) ----
B = 2            # batch
C = 3            # input channels
IMG = 32         # spatial size (224 in the real model)
P = 16           # patch size
NP = (IMG // P) ** 2   # number of patches (196 in the real model)
S = NP + 1       # sequence length incl. CLS token (197 in the real model)
S_PAD = 8        # sublane-aligned padded sequence (197 -> 200/208/256 at real scale)
D = 32           # hidden size (768 in the real model)
H = 4            # attention heads (12 in the real model)
DH = D // H      # head dim (64 in the real model)
MLP = 64         # intermediate size (3072 in the real model)
LAYERS = 2       # encoder layers (12 in the real model)
K = C * P * P    # flattened patch dim
EPS = 1e-12      # HF ViT LayerNorm eps
NEG_INF = -1e30  # pre-softmax mask value for padded key columns

_ERF_P = 0.3275911
_ERF_A = (0.254829592, -0.284496736, 1.421413741, -1.453152027, 1.061405429)


# --------------------------- in-kernel helpers ---------------------------

def _layer_norm(x, g, b):
    # torch.nn.LayerNorm semantics: biased variance over last axis, eps inside rsqrt.
    mu = jnp.mean(x, axis=-1, keepdims=True)
    xc = x - mu
    var = jnp.mean(xc * xc, axis=-1, keepdims=True)
    return xc * lax.rsqrt(var + EPS) * g + b


def _erf(x):
    # Abramowitz–Stegun 7.1.26 (max abs err ~1.5e-7); exact division keeps that accuracy.
    sgn = jnp.where(x >= 0.0, 1.0, -1.0)
    a = jnp.abs(x)
    t = 1.0 / (1.0 + _ERF_P * a)
    poly = t * (_ERF_A[0] + t * (_ERF_A[1] + t * (_ERF_A[2] + t * (_ERF_A[3] + t * _ERF_A[4]))))
    return sgn * (1.0 - poly * jnp.exp(-a * a))


def _gelu_exact(x):
    # HF ViT uses exact (erf-based) GELU.
    return 0.5 * x * (1.0 + _erf(x * (1.0 / math.sqrt(2.0))))


# ------------------------------- fused kernel -------------------------------
# grid = (batch "parallel", layer "arbitrary"); hidden state is a VMEM scratch accumulator.

def vit_fused_kernel(patches_ref, pw_ref, pb_ref, cls_ref, pos_ref,
                     ln1g_ref, ln1b_ref, wqkv_ref, bqkv_ref, wo_ref, bo_ref,
                     ln2g_ref, ln2b_ref, w1_ref, b1_ref, w2_ref, b2_ref,
                     lng_ref, lnb_ref,
                     out_ref,
                     x_ref, ctx_ref):
    l = pl.program_id(1)

    # --- layer 0 entry: patch embed + CLS + position embeddings into the padded scratch ---
    @pl.when(l == 0)
    def _init():
        pe = (jnp.dot(patches_ref[0].astype(jnp.bfloat16), pw_ref[...],
                      preferred_element_type=jnp.float32) + pb_ref[...])     # (NP, D)
        x_ref[...] = jnp.zeros_like(x_ref)                  # zero padded rows
        x_ref[0:1, :] = cls_ref[...] + pos_ref[0:1, :]
        x_ref[1:S, :] = pe + pos_ref[1:S, :]

    x = x_ref[...]                                          # (S_PAD, D) f32, VMEM-resident
    scale = 1.0 / math.sqrt(DH)
    # Padded key columns masked to -inf before softmax (hoisted out of the head loop).
    kmask = lax.broadcasted_iota(jnp.int32, (S_PAD, S_PAD), 1) < S

    # --- multi-head self-attention (pre-LN); dropout = identity (eval mode) ---
    h = _layer_norm(x, ln1g_ref[0], ln1b_ref[0])
    qkv = (jnp.dot(h.astype(jnp.bfloat16), wqkv_ref[0],
                   preferred_element_type=jnp.float32) + bqkv_ref[0])        # (S_PAD, 3D)
    qkv_b = qkv.astype(jnp.bfloat16)

    # TODO(synk): at ViT-base scale (H=12, DH=64) switch to a single head-batched
    # lax.dot_general on an (H, S, DH) layout for fewer/larger MXU pushes; here each head's
    # context is written straight into ctx_ref (no ctx list, no concat, bounded live ranges).
    for hd in range(H):
        sl = slice(hd * DH, (hd + 1) * DH)
        qh = qkv_b[:, sl]
        kh = qkv_b[:, D + hd * DH: D + (hd + 1) * DH]
        vh = qkv_b[:, 2 * D + hd * DH: 2 * D + (hd + 1) * DH]
        # contract last axes directly -> no materialized kh.T
        s = lax.dot_general(qh, kh, (((1,), (1,)), ((), ())),
                            preferred_element_type=jnp.float32) * scale      # (S_PAD, S_PAD)
        s = jnp.where(kmask, s, NEG_INF)
        s = s - jnp.max(s, axis=-1, keepdims=True)
        e = jnp.exp(s)
        p = e / jnp.sum(e, axis=-1, keepdims=True)          # exact division (matches HF)
        ctx_ref[:, sl] = jnp.dot(p.astype(jnp.bfloat16), vh,
                                 preferred_element_type=jnp.float32)

    attn = (jnp.dot(ctx_ref[...].astype(jnp.bfloat16), wo_ref[0],
                    preferred_element_type=jnp.float32) + bo_ref[0])
    x = x + attn                                            # residual 1

    # --- MLP (pre-LN), exact erf GELU ---
    h2 = _layer_norm(x, ln2g_ref[0], ln2b_ref[0])
    m = (jnp.dot(h2.astype(jnp.bfloat16), w1_ref[0],
                 preferred_element_type=jnp.float32) + b1_ref[0])
    m = _gelu_exact(m)
    m = (jnp.dot(m.astype(jnp.bfloat16), w2_ref[0],
                 preferred_element_type=jnp.float32) + b2_ref[0])
    x = x + m                                               # residual 2
    x_ref[...] = x                                          # carry to next layer step

    # --- final LayerNorm + one lane-dense full-sequence store on the last layer ---
    @pl.when(l == pl.num_programs(1) - 1)
    def _final():
        out_ref[0] = _layer_norm(x, lng_ref[...], lnb_ref[...])


# ------------------------------ wrapper ------------------------------

def _rep_spec(shape):
    nd = len(shape)
    return pl.BlockSpec(shape, lambda b, l, _n=nd: (0,) * _n)       # resident, replicated


def _layer_spec(shape):
    rest = shape[1:]
    nz = len(rest)
    # stream one layer's weight block per layer grid step (double-buffered by the pipeline)
    return pl.BlockSpec((1, *rest), lambda b, l, _n=nz: (l,) + (0,) * _n)


_PER_LAYER = {"ln1_g", "ln1_b", "wqkv", "bqkv", "wo", "bo",
              "ln2_g", "ln2_b", "w1", "b1", "w2", "b2"}
_WEIGHT_ORDER = ["patch_w", "patch_b", "cls", "pos",
                 "ln1_g", "ln1_b", "wqkv", "bqkv", "wo", "bo",
                 "ln2_g", "ln2_b", "w1", "b1", "w2", "b2",
                 "ln_g", "ln_b"]


def vit_forward(x, params):
    """x: (B, C, IMG, IMG) float32, NCHW like the PyTorch module."""
    bsz = x.shape[0]
    # TODO(synk): at real 224x224 scale, fold this im2col into the kernel via a patch-row
    # index_map (or feed NHWC) instead of a standalone XLA transpose; here it is ~12 KB.
    patches = x.reshape(bsz, C, IMG // P, P, IMG // P, P)
    patches = patches.transpose(0, 2, 4, 1, 3, 5).reshape(bsz, NP, K)   # (c, ph, pw) order

    weights = [params[n] for n in _WEIGHT_ORDER]
    in_specs = [pl.BlockSpec((1, NP, K), lambda b, l: (b, 0, 0))]
    in_specs += [_layer_spec(params[n].shape) if n in _PER_LAYER else _rep_spec(params[n].shape)
                 for n in _WEIGHT_ORDER]

    out = pl.pallas_call(
        vit_fused_kernel,
        out_shape=jax.ShapeDtypeStruct((bsz, S_PAD, D), jnp.float32),
        grid=(bsz, LAYERS),
        in_specs=in_specs,
        out_specs=pl.BlockSpec((1, S_PAD, D), lambda b, l: (b, 0, 0)),
        scratch_shapes=[pltpu.VMEM((S_PAD, D), jnp.float32),   # hidden-state accumulator
                        pltpu.VMEM((S_PAD, D), jnp.float32)],  # per-layer attention context
        compiler_params=pltpu.CompilerParams(
            dimension_semantics=("parallel", "arbitrary"),     # batch across TCs, layers carry
            vmem_limit_bytes=48 * 1024 * 1024,                 # headroom on all gens (v7x: 64 MiB)
        ),
    )(patches, *weights)

    last = out[:, :S, :]          # drop sequence padding (free HBM-side slice in XLA)
    # TODO(synk): ViTModel also computes pooler_output = tanh(dense(last[:,0])) but
    # ModelViT224.forward never uses it, so it is intentionally not computed.
    return last[:, 1:], last[:, 0]


# ---------------------------- parameter init ----------------------------

def init_params(key):
    ks = jax.random.split(key, 3 + LAYERS)

    def nrm(k, shape, scale=0.02):
        return scale * jax.random.normal(k, shape, jnp.float32)

    layer_keys = [jax.random.split(ks[3 + i], 4) for i in range(LAYERS)]
    pos = jnp.zeros((S_PAD, D), jnp.float32).at[:S].set(nrm(ks[2], (S, D)))
    params = {
        # matmul operands stored in bf16 (f32 MXU accumulation in-kernel); the rest f32.
        "patch_w": nrm(ks[0], (K, D)).astype(jnp.bfloat16),     # conv weight, reshaped (K, D)
        "patch_b": jnp.zeros((1, D), jnp.float32),
        "cls": nrm(ks[1], (1, D)),
        "pos": pos,                                             # padded rows are zero
        "ln_g": jnp.ones((1, D), jnp.float32),
        "ln_b": jnp.zeros((1, D), jnp.float32),
        # per-layer weights stacked along a leading LAYERS axis; the kernel streams one
        # layer per grid step (wqkv = q|k|v column-concatenation order, (in, out) layout).
        "ln1_g": jnp.ones((LAYERS, 1, D), jnp.float32),
        "ln1_b": jnp.zeros((LAYERS, 1, D), jnp.float32),
        "wqkv": jnp.stack([nrm(layer_keys[i][0], (D, 3 * D)) for i in range(LAYERS)]
                          ).astype(jnp.bfloat16),
        "bqkv": jnp.zeros((LAYERS, 1, 3 * D), jnp.float32),
        "wo": jnp.stack([nrm(layer_keys[i][1], (D, D)) for i in range(LAYERS)]
                        ).astype(jnp.bfloat16),
        "bo": jnp.zeros((LAYERS, 1, D), jnp.float32),
        "ln2_g": jnp.ones((LAYERS, 1, D), jnp.float32),
        "ln2_b": jnp.zeros((LAYERS, 1, D), jnp.float32),
        "w1": jnp.stack([nrm(layer_keys[i][2], (D, MLP)) for i in range(LAYERS)]
                        ).astype(jnp.bfloat16),
        "b1": jnp.zeros((LAYERS, 1, MLP), jnp.float32),
        "w2": jnp.stack([nrm(layer_keys[i][3], (MLP, D)) for i in range(LAYERS)]
                        ).astype(jnp.bfloat16),
        "b2": jnp.zeros((LAYERS, 1, D), jnp.float32),
    }
    return params


if __name__ == "__main__":
    key = jax.random.PRNGKey(0)
    kx, kp = jax.random.split(key)
    x = jax.random.normal(kx, (B, C, IMG, IMG), jnp.float32)   # NCHW, like PyTorch
    params = init_params(kp)

    out_emb, out_pool = vit_forward(x, params)
    jax.block_until_ready((out_emb, out_pool))

    assert out_emb.shape == (B, NP, D), out_emb.shape
    assert out_pool.shape == (B, D), out_pool.shape
    assert bool(jnp.all(jnp.isfinite(out_emb))) and bool(jnp.all(jnp.isfinite(out_pool)))
    print("KERNEL_OK")
</pallas_src>

<mosaic_0001>
module attributes {stable_mosaic.version = 11 : i64} {
  func.func @vit_fused_kernel(%arg0: i32, %arg1: i32, %arg2: memref<1x4x768xf32, #tpu.memory_space<vmem>>, %arg3: memref<768x32xbf16, #tpu.memory_space<vmem>>, %arg4: memref<1x32xf32, #tpu.memory_space<vmem>>, %arg5: memref<1x32xf32, #tpu.memory_space<vmem>>, %arg6: memref<8x32xf32, #tpu.memory_space<vmem>>, %arg7: memref<1x1x32xf32, #tpu.memory_space<vmem>>, %arg8: memref<1x1x32xf32, #tpu.memory_space<vmem>>, %arg9: memref<1x32x96xbf16, #tpu.memory_space<vmem>>, %arg10: memref<1x1x96xf32, #tpu.memory_space<vmem>>, %arg11: memref<1x32x32xbf16, #tpu.memory_space<vmem>>, %arg12: memref<1x1x32xf32, #tpu.memory_space<vmem>>, %arg13: memref<1x1x32xf32, #tpu.memory_space<vmem>>, %arg14: memref<1x1x32xf32, #tpu.memory_space<vmem>>, %arg15: memref<1x32x64xbf16, #tpu.memory_space<vmem>>, %arg16: memref<1x1x64xf32, #tpu.memory_space<vmem>>, %arg17: memref<1x64x32xbf16, #tpu.memory_space<vmem>>, %arg18: memref<1x1x32xf32, #tpu.memory_space<vmem>>, %arg19: memref<1x32xf32, #tpu.memory_space<vmem>>, %arg20: memref<1x32xf32, #tpu.memory_space<vmem>>, %arg21: memref<1x8x32xf32, #tpu.memory_space<vmem>>, %arg22: memref<8x32xf32, #tpu.memory_space<vmem>>, %arg23: memref<8x32xf32, #tpu.memory_space<vmem>>) attributes {dimension_semantics = [#tpu.dimension_semantics<parallel>, #tpu.dimension_semantics<arbitrary>], iteration_bounds = array<i64: 2, 2>, scalar_prefetch = 0 : i64, scratch_operands = 2 : i64, tpu.core_type = #tpu.core_type<tc>, window_params = [{transform_indices = @transform_0, window_bounds = array<i64: 1, 4, 768>}, {pipeline_mode = #tpu.pipeline_mode<synchronous>, transform_indices = @transform_1, window_bounds = array<i64: 768, 32>}, {pipeline_mode = #tpu.pipeline_mode<synchronous>, transform_indices = @transform_2, window_bounds = array<i64: 1, 32>}, {pipeline_mode = #tpu.pipeline_mode<synchronous>, transform_indices = @transform_3, window_bounds = array<i64: 1, 32>}, {pipeline_mode = #tpu.pipeline_mode<synchronous>, transform_indices = @transform_4, window_bounds = array<i64: 8, 32>}, {transform_indices = @transform_5, window_bounds = array<i64: 1, 1, 32>}, {transform_indices = @transform_6, window_bounds = array<i64: 1, 1, 32>}, {transform_indices = @transform_7, window_bounds = array<i64: 1, 32, 96>}, {transform_indices = @transform_8, window_bounds = array<i64: 1, 1, 96>}, {transform_indices = @transform_9, window_bounds = array<i64: 1, 32, 32>}, {transform_indices = @transform_10, window_bounds = array<i64: 1, 1, 32>}, {transform_indices = @transform_11, window_bounds = array<i64: 1, 1, 32>}, {transform_indices = @transform_12, window_bounds = array<i64: 1, 1, 32>}, {transform_indices = @transform_13, window_bounds = array<i64: 1, 32, 64>}, {transform_indices = @transform_14, window_bounds = array<i64: 1, 1, 64>}, {transform_indices = @transform_15, window_bounds = array<i64: 1, 64, 32>}, {transform_indices = @transform_16, window_bounds = array<i64: 1, 1, 32>}, {pipeline_mode = #tpu.pipeline_mode<synchronous>, transform_indices = @transform_17, window_bounds = array<i64: 1, 32>}, {pipeline_mode = #tpu.pipeline_mode<synchronous>, transform_indices = @transform_18, window_bounds = array<i64: 1, 32>}, {transform_indices = @transform_19, window_bounds = array<i64: 1, 8, 32>}]} {
    %c0_i32 = arith.constant 0 : i32
    %0 = arith.cmpi eq, %arg1, %c0_i32 : i32
    %1 = arith.extui %0 : i1 to i32
    %c0_i32_0 = arith.constant 0 : i32
    %2 = arith.cmpi ne, %1, %c0_i32_0 : i32
    scf.if %2 {
      %c0_101 = arith.constant 0 : index
      %c0_102 = arith.constant 0 : index
      %c0_103 = arith.constant 0 : index
      %216 = vector.load %arg2[%c0_101, %c0_102, %c0_103] : memref<1x4x768xf32, #tpu.memory_space<vmem>>, vector<1x4x768xf32>
      %217 = vector.shape_cast %216 : vector<1x4x768xf32> to vector<4x768xf32>
      %218 = arith.truncf %217 : vector<4x768xf32> to vector<4x768xbf16>
      %c0_104 = arith.constant 0 : index
      %c0_105 = arith.constant 0 : index
      %219 = vector.load %arg3[%c0_104, %c0_105] : memref<768x32xbf16, #tpu.memory_space<vmem>>, vector<768x32xbf16>
      %cst_106 = arith.constant dense<0.000000e+00> : vector<4x32xf32>
      %220 = tpu.matmul %218, %219, %cst_106 {dimension_numbers = #tpu.dot_dimension_numbers<[1], [0], [0], [1], [0, 0, 1, 1], [], []>} : vector<4x768xbf16>, vector<768x32xbf16>, vector<4x32xf32> -> vector<4x32xf32>
      %c0_107 = arith.constant 0 : index
      %c0_108 = arith.constant 0 : index
      %221 = vector.load %arg4[%c0_107, %c0_108] : memref<1x32xf32, #tpu.memory_space<vmem>>, vector<1x32xf32>
      %222 = vector.broadcast %221 : vector<1x32xf32> to vector<4x32xf32>
      %223 = arith.addf %220, %222 : vector<4x32xf32>
      %cst_109 = arith.constant 0.000000e+00 : f32
      %224 = vector.broadcast %cst_109 : f32 to vector<8x32xf32>
      %c0_110 = arith.constant 0 : index
      %c0_111 = arith.constant 0 : index
      %225 = vector.load %arg22[%c0_110, %c0_111] : memref<8x32xf32, #tpu.memory_space<vmem>>, vector<8x32xf32>
      tpu.vector_store %arg22[%c0_110, %c0_111], %224 {strides = array<i32>} : memref<8x32xf32, #tpu.memory_space<vmem>>, vector<8x32xf32>,
      %c0_112 = arith.constant 0 : index
      %c0_113 = arith.constant 0 : index
      %226 = vector.load %arg5[%c0_112, %c0_113] : memref<1x32xf32, #tpu.memory_space<vmem>>, vector<1x32xf32>
      %c0_114 = arith.constant 0 : index
      %c0_115 = arith.constant 0 : index
      %227 = vector.load %arg6[%c0_114, %c0_115] : memref<8x32xf32, #tpu.memory_space<vmem>>, vector<1x32xf32>
      %228 = arith.addf %226, %227 : vector<1x32xf32>
      %c0_116 = arith.constant 0 : index
      %c0_117 = arith.constant 0 : index
      %229 = vector.load %arg22[%c0_116, %c0_117] : memref<8x32xf32, #tpu.memory_space<vmem>>, vector<1x32xf32>
      tpu.vector_store %arg22[%c0_116, %c0_117], %228 {strides = array<i32>} : memref<8x32xf32, #tpu.memory_space<vmem>>, vector<1x32xf32>,
      %c1 = arith.constant 1 : index
      %c0_118 = arith.constant 0 : index
      %230 = vector.load %arg6[%c1, %c0_118] : memref<8x32xf32, #tpu.memory_space<vmem>>, vector<4x32xf32>
      %231 = arith.addf %223, %230 : vector<4x32xf32>
      %c1_119 = arith.constant 1 : index
      %c0_120 = arith.constant 0 : index
      %232 = vector.load %arg22[%c1_119, %c0_120] : memref<8x32xf32, #tpu.memory_space<vmem>>, vector<4x32xf32>
      tpu.vector_store %arg22[%c1_119, %c0_120], %231 {strides = array<i32>} : memref<8x32xf32, #tpu.memory_space<vmem>>, vector<4x32xf32>,
    } else {
    }
    %c0 = arith.constant 0 : index
    %c0_1 = arith.constant 0 : index
    %3 = vector.load %arg22[%c0, %c0_1] : memref<8x32xf32, #tpu.memory_space<vmem>>, vector<8x32xf32>
    %4 = tpu.iota {dimensions = array<i32: 1>} : vector<8x8xi32>
    %c5_i32 = arith.constant 5 : i32
    %5 = vector.broadcast %c5_i32 : i32 to vector<8x8xi32>
    %6 = arith.cmpi slt, %4, %5 : vector<8x8xi32>
    %c0_2 = arith.constant 0 : index
    %c0_3 = arith.constant 0 : index
    %c0_4 = arith.constant 0 : index
    %7 = vector.load %arg7[%c0_2, %c0_3, %c0_4] : memref<1x1x32xf32, #tpu.memory_space<vmem>>, vector<1x1x32xf32>
    %8 = vector.shape_cast %7 : vector<1x1x32xf32> to vector<1x32xf32>
    %c0_5 = arith.constant 0 : index
    %c0_6 = arith.constant 0 : index
    %c0_7 = arith.constant 0 : index
    %9 = vector.load %arg8[%c0_5, %c0_6, %c0_7] : memref<1x1x32xf32, #tpu.memory_space<vmem>>, vector<1x1x32xf32>
    %10 = vector.shape_cast %9 : vector<1x1x32xf32> to vector<1x32xf32>
    %cst = arith.constant dense<0.000000e+00> : vector<8xf32>
    %11 = vector.multi_reduction <add>, %3, %cst [1] : vector<8x32xf32> to vector<8xf32>
    %12 = vector.shape_cast %11 : vector<8xf32> to vector<8x1xf32>
    %cst_8 = arith.constant 3.200000e+01 : f32
    %13 = vector.broadcast %cst_8 : f32 to vector<8x1xf32>
    %14 = arith.divf %12, %13 : vector<8x1xf32>
    %15 = vector.broadcast %14 : vector<8x1xf32> to vector<8x32xf32>
    %16 = arith.subf %3, %15 : vector<8x32xf32>
    %17 = arith.mulf %16, %16 : vector<8x32xf32>
    %cst_9 = arith.constant dense<0.000000e+00> : vector<8xf32>
    %18 = vector.multi_reduction <add>, %17, %cst_9 [1] : vector<8x32xf32> to vector<8xf32>
    %19 = vector.shape_cast %18 : vector<8xf32> to vector<8x1xf32>
    %cst_10 = arith.constant 3.200000e+01 : f32
    %20 = vector.broadcast %cst_10 : f32 to vector<8x1xf32>
    %21 = arith.divf %19, %20 : vector<8x1xf32>
    %cst_11 = arith.constant 9.99999996E-13 : f32
    %22 = vector.broadcast %cst_11 : f32 to vector<8x1xf32>
    %23 = arith.addf %21, %22 : vector<8x1xf32>
    %24 = math.rsqrt %23 : vector<8x1xf32>
    %25 = vector.broadcast %24 : vector<8x1xf32> to vector<8x32xf32>
    %26 = arith.mulf %16, %25 : vector<8x32xf32>
    %27 = vector.broadcast %8 : vector<1x32xf32> to vector<8x32xf32>
    %28 = arith.mulf %26, %27 : vector<8x32xf32>
    %29 = vector.broadcast %10 : vector<1x32xf32> to vector<8x32xf32>
    %30 = arith.addf %28, %29 : vector<8x32xf32>
    %31 = arith.truncf %30 : vector<8x32xf32> to vector<8x32xbf16>
    %c0_12 = arith.constant 0 : index
    %c0_13 = arith.constant 0 : index
    %c0_14 = arith.constant 0 : index
    %32 = vector.load %arg9[%c0_12, %c0_13, %c0_14] : memref<1x32x96xbf16, #tpu.memory_space<vmem>>, vector<1x32x96xbf16>
    %33 = vector.shape_cast %32 : vector<1x32x96xbf16> to vector<32x96xbf16>
    %cst_15 = arith.constant dense<0.000000e+00> : vector<8x96xf32>
    %34 = tpu.matmul %31, %33, %cst_15 {dimension_numbers = #tpu.dot_dimension_numbers<[1], [0], [0], [1], [0, 0, 1, 1], [], []>} : vector<8x32xbf16>, vector<32x96xbf16>, vector<8x96xf32> -> vector<8x96xf32>
    %c0_16 = arith.constant 0 : index
    %c0_17 = arith.constant 0 : index
    %c0_18 = arith.constant 0 : index
    %35 = vector.load %arg10[%c0_16, %c0_17, %c0_18] : memref<1x1x96xf32, #tpu.memory_space<vmem>>, vector<1x1x96xf32>
    %36 = vector.shape_cast %35 : vector<1x1x96xf32> to vector<1x96xf32>
    %37 = vector.broadcast %36 : vector<1x96xf32> to vector<8x96xf32>
    %38 = arith.addf %34, %37 : vector<8x96xf32>
    %39 = arith.truncf %38 : vector<8x96xf32> to vector<8x96xbf16>
    %40 = vector.extract_strided_slice %39 {offsets = [0, 0], sizes = [8, 8], strides = [1, 1]} : vector<8x96xbf16> to vector<8x8xbf16>
    %41 = vector.extract_strided_slice %39 {offsets = [0, 32], sizes = [8, 8], strides = [1, 1]} : vector<8x96xbf16> to vector<8x8xbf16>
    %42 = vector.extract_strided_slice %39 {offsets = [0, 64], sizes = [8, 8], strides = [1, 1]} : vector<8x96xbf16> to vector<8x8xbf16>
    %cst_19 = arith.constant dense<0.000000e+00> : vector<8x8xf32>
    %43 = tpu.matmul %40, %41, %cst_19 {dimension_numbers = #tpu.dot_dimension_numbers<[1], [1], [0], [0], [0, 0, 1, 0], [], []>} : vector<8x8xbf16>, vector<8x8xbf16>, vector<8x8xf32> -> vector<8x8xf32>
    %cst_20 = arith.constant 0.353553385 : f32
    %44 = vector.broadcast %cst_20 : f32 to vector<8x8xf32>
    %45 = arith.mulf %43, %44 : vector<8x8xf32>
    %cst_21 = arith.constant -1.000000e+30 : f32
    %46 = vector.broadcast %cst_21 : f32 to vector<8x8xf32>
    %47 = arith.select %6, %45, %46 : vector<8x8xi1>, vector<8x8xf32>
    %cst_22 = arith.constant dense<0xFF800000> : vector<8xf32>
    %48 = vector.multi_reduction <maximumf>, %47, %cst_22 [1] : vector<8x8xf32> to vector<8xf32>
    %49 = vector.shape_cast %48 : vector<8xf32> to vector<8x1xf32>
    %50 = vector.broadcast %49 : vector<8x1xf32> to vector<8x8xf32>
    %51 = arith.subf %47, %50 : vector<8x8xf32>
    %52 = math.exp %51 : vector<8x8xf32>
    %cst_23 = arith.constant dense<0.000000e+00> : vector<8xf32>
    %53 = vector.multi_reduction <add>, %52, %cst_23 [1] : vector<8x8xf32> to vector<8xf32>
    %54 = vector.shape_cast %53 : vector<8xf32> to vector<8x1xf32>
    %55 = vector.broadcast %54 : vector<8x1xf32> to vector<8x8xf32>
    %56 = arith.divf %52, %55 : vector<8x8xf32>
    %57 = arith.truncf %56 : vector<8x8xf32> to vector<8x8xbf16>
    %cst_24 = arith.constant dense<0.000000e+00> : vector<8x8xf32>
    %58 = tpu.matmul %57, %42, %cst_24 {dimension_numbers = #tpu.dot_dimension_numbers<[1], [0], [0], [1], [0, 0, 1, 1], [], []>} : vector<8x8xbf16>, vector<8x8xbf16>, vector<8x8xf32> -> vector<8x8xf32>
    %c0_25 = arith.constant 0 : index
    %c0_26 = arith.constant 0 : index
    %59 = vector.load %arg23[%c0_25, %c0_26] : memref<8x32xf32, #tpu.memory_space<vmem>>, vector<8x8xf32>
    tpu.vector_store %arg23[%c0_25, %c0_26], %58 {strides = array<i32>} : memref<8x32xf32, #tpu.memory_space<vmem>>, vector<8x8xf32>,
    %60 = vector.extract_strided_slice %39 {offsets = [0, 8], sizes = [8, 8], strides = [1, 1]} : vector<8x96xbf16> to vector<8x8xbf16>
    %61 = vector.extract_strided_slice %39 {offsets = [0, 40], sizes = [8, 8], strides = [1, 1]} : vector<8x96xbf16> to vector<8x8xbf16>
    %62 = vector.extract_strided_slice %39 {offsets = [0, 72], sizes = [8, 8], strides = [1, 1]} : vector<8x96xbf16> to vector<8x8xbf16>
    %cst_27 = arith.constant dense<0.000000e+00> : vector<8x8xf32>
    %63 = tpu.matmul %60, %61, %cst_27 {dimension_numbers = #tpu.dot_dimension_numbers<[1], [1], [0], [0], [0, 0, 1, 0], [], []>} : vector<8x8xbf16>, vector<8x8xbf16>, vector<8x8xf32> -> vector<8x8xf32>
    %cst_28 = arith.constant 0.353553385 : f32
    %64 = vector.broadcast %cst_28 : f32 to vector<8x8xf32>
    %65 = arith.mulf %63, %64 : vector<8x8xf32>
    %cst_29 = arith.constant -1.000000e+30 : f32
    %66 = vector.broadcast %cst_29 : f32 to vector<8x8xf32>
    %67 = arith.select %6, %65, %66 : vector<8x8xi1>, vector<8x8xf32>
    %cst_30 = arith.constant dense<0xFF800000> : vector<8xf32>
    %68 = vector.multi_reduction <maximumf>, %67, %cst_30 [1] : vector<8x8xf32> to vector<8xf32>
    %69 = vector.shape_cast %68 : vector<8xf32> to vector<8x1xf32>
    %70 = vector.broadcast %69 : vector<8x1xf32> to vector<8x8xf32>
    %71 = arith.subf %67, %70 : vector<8x8xf32>
    %72 = math.exp %71 : vector<8x8xf32>
    %cst_31 = arith.constant dense<0.000000e+00> : vector<8xf32>
    %73 = vector.multi_reduction <add>, %72, %cst_31 [1] : vector<8x8xf32> to vector<8xf32>
    %74 = vector.shape_cast %73 : vector<8xf32> to vector<8x1xf32>
    %75 = vector.broadcast %74 : vector<8x1xf32> to vector<8x8xf32>
    %76 = arith.divf %72, %75 : vector<8x8xf32>
    %77 = arith.truncf %76 : vector<8x8xf32> to vector<8x8xbf16>
    %cst_32 = arith.constant dense<0.000000e+00> : vector<8x8xf32>
    %78 = tpu.matmul %77, %62, %cst_32 {dimension_numbers = #tpu.dot_dimension_numbers<[1], [0], [0], [1], [0, 0, 1, 1], [], []>} : vector<8x8xbf16>, vector<8x8xbf16>, vector<8x8xf32> -> vector<8x8xf32>
    %c0_33 = arith.constant 0 : index
    %c8 = arith.constant 8 : index
    %79 = vector.load %arg23[%c0_33, %c8] : memref<8x32xf32, #tpu.memory_space<vmem>>, vector<8x8xf32>
    tpu.vector_store %arg23[%c0_33, %c8], %78 {strides = array<i32>} : memref<8x32xf32, #tpu.memory_space<vmem>>, vector<8x8xf32>,
    %80 = vector.extract_strided_slice %39 {offsets = [0, 16], sizes = [8, 8], strides = [1, 1]} : vector<8x96xbf16> to vector<8x8xbf16>
    %81 = vector.extract_strided_slice %39 {offsets = [0, 48], sizes = [8, 8], strides = [1, 1]} : vector<8x96xbf16> to vector<8x8xbf16>
    %82 = vector.extract_strided_slice %39 {offsets = [0, 80], sizes = [8, 8], strides = [1, 1]} : vector<8x96xbf16> to vector<8x8xbf16>
    %cst_34 = arith.constant dense<0.000000e+00> : vector<8x8xf32>
    %83 = tpu.matmul %80, %81, %cst_34 {dimension_numbers = #tpu.dot_dimension_numbers<[1], [1], [0], [0], [0, 0, 1, 0], [], []>} : vector<8x8xbf16>, vector<8x8xbf16>, vector<8x8xf32> -> vector<8x8xf32>
    %cst_35 = arith.constant 0.353553385 : f32
    %84 = vector.broadcast %cst_35 : f32 to vector<8x8xf32>
    %85 = arith.mulf %83, %84 : vector<8x8xf32>
    %cst_36 = arith.constant -1.000000e+30 : f32
    %86 = vector.broadcast %cst_36 : f32 to vector<8x8xf32>
    %87 = arith.select %6, %85, %86 : vector<8x8xi1>, vector<8x8xf32>
    %cst_37 = arith.constant dense<0xFF800000> : vector<8xf32>
    %88 = vector.multi_reduction <maximumf>, %87, %cst_37 [1] : vector<8x8xf32> to vector<8xf32>
    %89 = vector.shape_cast %88 : vector<8xf32> to vector<8x1xf32>
    %90 = vector.broadcast %89 : vector<8x1xf32> to vector<8x8xf32>
    %91 = arith.subf %87, %90 : vector<8x8xf32>
    %92 = math.exp %91 : vector<8x8xf32>
    %cst_38 = arith.constant dense<0.000000e+00> : vector<8xf32>
    %93 = vector.multi_reduction <add>, %92, %cst_38 [1] : vector<8x8xf32> to vector<8xf32>
    %94 = vector.shape_cast %93 : vector<8xf32> to vector<8x1xf32>
    %95 = vector.broadcast %94 : vector<8x1xf32> to vector<8x8xf32>
    %96 = arith.divf %92, %95 : vector<8x8xf32>
    %97 = arith.truncf %96 : vector<8x8xf32> to vector<8x8xbf16>
    %cst_39 = arith.constant dense<0.000000e+00> : vector<8x8xf32>
    %98 = tpu.matmul %97, %82, %cst_39 {dimension_numbers = #tpu.dot_dimension_numbers<[1], [0], [0], [1], [0, 0, 1, 1], [], []>} : vector<8x8xbf16>, vector<8x8xbf16>, vector<8x8xf32> -> vector<8x8xf32>
    %c0_40 = arith.constant 0 : index
    %c16 = arith.constant 16 : index
    %99 = vector.load %arg23[%c0_40, %c16] : memref<8x32xf32, #tpu.memory_space<vmem>>, vector<8x8xf32>
    tpu.vector_store %arg23[%c0_40, %c16], %98 {strides = array<i32>} : memref<8x32xf32, #tpu.memory_space<vmem>>, vector<8x8xf32>,
    %100 = vector.extract_strided_slice %39 {offsets = [0, 24], sizes = [8, 8], strides = [1, 1]} : vector<8x96xbf16> to vector<8x8xbf16>
    %101 = vector.extract_strided_slice %39 {offsets = [0, 56], sizes = [8, 8], strides = [1, 1]} : vector<8x96xbf16> to vector<8x8xbf16>
    %102 = vector.extract_strided_slice %39 {offsets = [0, 88], sizes = [8, 8], strides = [1, 1]} : vector<8x96xbf16> to vector<8x8xbf16>
    %cst_41 = arith.constant dense<0.000000e+00> : vector<8x8xf32>
    %103 = tpu.matmul %100, %101, %cst_41 {dimension_numbers = #tpu.dot_dimension_numbers<[1], [1], [0], [0], [0, 0, 1, 0], [], []>} : vector<8x8xbf16>, vector<8x8xbf16>, vector<8x8xf32> -> vector<8x8xf32>
    %cst_42 = arith.constant 0.353553385 : f32
    %104 = vector.broadcast %cst_42 : f32 to vector<8x8xf32>
    %105 = arith.mulf %103, %104 : vector<8x8xf32>
    %cst_43 = arith.constant -1.000000e+30 : f32
    %106 = vector.broadcast %cst_43 : f32 to vector<8x8xf32>
    %107 = arith.select %6, %105, %106 : vector<8x8xi1>, vector<8x8xf32>
    %cst_44 = arith.constant dense<0xFF800000> : vector<8xf32>
    %108 = vector.multi_reduction <maximumf>, %107, %cst_44 [1] : vector<8x8xf32> to vector<8xf32>
    %109 = vector.shape_cast %108 : vector<8xf32> to vector<8x1xf32>
    %110 = vector.broadcast %109 : vector<8x1xf32> to vector<8x8xf32>
    %111 = arith.subf %107, %110 : vector<8x8xf32>
    %112 = math.exp %111 : vector<8x8xf32>
    %cst_45 = arith.constant dense<0.000000e+00> : vector<8xf32>
    %113 = vector.multi_reduction <add>, %112, %cst_45 [1] : vector<8x8xf32> to vector<8xf32>
    %114 = vector.shape_cast %113 : vector<8xf32> to vector<8x1xf32>
    %115 = vector.broadcast %114 : vector<8x1xf32> to vector<8x8xf32>
    %116 = arith.divf %112, %115 : vector<8x8xf32>
    %117 = arith.truncf %116 : vector<8x8xf32> to vector<8x8xbf16>
    %cst_46 = arith.constant dense<0.000000e+00> : vector<8x8xf32>
    %118 = tpu.matmul %117, %102, %cst_46 {dimension_numbers = #tpu.dot_dimension_numbers<[1], [0], [0], [1], [0, 0, 1, 1], [], []>} : vector<8x8xbf16>, vector<8x8xbf16>, vector<8x8xf32> -> vector<8x8xf32>
    %c0_47 = arith.constant 0 : index
    %c24 = arith.constant 24 : index
    %119 = vector.load %arg23[%c0_47, %c24] : memref<8x32xf32, #tpu.memory_space<vmem>>, vector<8x8xf32>
    tpu.vector_store %arg23[%c0_47, %c24], %118 {strides = array<i32>} : memref<8x32xf32, #tpu.memory_space<vmem>>, vector<8x8xf32>,
    %c0_48 = arith.constant 0 : index
    %c0_49 = arith.constant 0 : index
    %120 = vector.load %arg23[%c0_48, %c0_49] : memref<8x32xf32, #tpu.memory_space<vmem>>, vector<8x32xf32>
    %121 = arith.truncf %120 : vector<8x32xf32> to vector<8x32xbf16>
    %c0_50 = arith.constant 0 : index
    %c0_51 = arith.constant 0 : index
    %c0_52 = arith.constant 0 : index
    %122 = vector.load %arg11[%c0_50, %c0_51, %c0_52] : memref<1x32x32xbf16, #tpu.memory_space<vmem>>, vector<1x32x32xbf16>
    %123 = vector.shape_cast %122 : vector<1x32x32xbf16> to vector<32x32xbf16>
    %cst_53 = arith.constant dense<0.000000e+00> : vector<8x32xf32>
    %124 = tpu.matmul %121, %123, %cst_53 {dimension_numbers = #tpu.dot_dimension_numbers<[1], [0], [0], [1], [0, 0, 1, 1], [], []>} : vector<8x32xbf16>, vector<32x32xbf16>, vector<8x32xf32> -> vector<8x32xf32>
    %c0_54 = arith.constant 0 : index
    %c0_55 = arith.constant 0 : index
    %c0_56 = arith.constant 0 : index
    %125 = vector.load %arg12[%c0_54, %c0_55, %c0_56] : memref<1x1x32xf32, #tpu.memory_space<vmem>>, vector<1x1x32xf32>
    %126 = vector.shape_cast %125 : vector<1x1x32xf32> to vector<1x32xf32>
    %127 = vector.broadcast %126 : vector<1x32xf32> to vector<8x32xf32>
    %128 = arith.addf %124, %127 : vector<8x32xf32>
    %129 = arith.addf %3, %128 : vector<8x32xf32>
    %c0_57 = arith.constant 0 : index
    %c0_58 = arith.constant 0 : index
    %c0_59 = arith.constant 0 : index
    %130 = vector.load %arg13[%c0_57, %c0_58, %c0_59] : memref<1x1x32xf32, #tpu.memory_space<vmem>>, vector<1x1x32xf32>
    %131 = vector.shape_cast %130 : vector<1x1x32xf32> to vector<1x32xf32>
    %c0_60 = arith.constant 0 : index
    %c0_61 = arith.constant 0 : index
    %c0_62 = arith.constant 0 : index
    %132 = vector.load %arg14[%c0_60, %c0_61, %c0_62] : memref<1x1x32xf32, #tpu.memory_space<vmem>>, vector<1x1x32xf32>
    %133 = vector.shape_cast %132 : vector<1x1x32xf32> to vector<1x32xf32>
    %cst_63 = arith.constant dense<0.000000e+00> : vector<8xf32>
    %134 = vector.multi_reduction <add>, %129, %cst_63 [1] : vector<8x32xf32> to vector<8xf32>
    %135 = vector.shape_cast %134 : vector<8xf32> to vector<8x1xf32>
    %cst_64 = arith.constant 3.200000e+01 : f32
    %136 = vector.broadcast %cst_64 : f32 to vector<8x1xf32>
    %137 = arith.divf %135, %136 : vector<8x1xf32>
    %138 = vector.broadcast %137 : vector<8x1xf32> to vector<8x32xf32>
    %139 = arith.subf %129, %138 : vector<8x32xf32>
    %140 = arith.mulf %139, %139 : vector<8x32xf32>
    %cst_65 = arith.constant dense<0.000000e+00> : vector<8xf32>
    %141 = vector.multi_reduction <add>, %140, %cst_65 [1] : vector<8x32xf32> to vector<8xf32>
    %142 = vector.shape_cast %141 : vector<8xf32> to vector<8x1xf32>
    %cst_66 = arith.constant 3.200000e+01 : f32
    %143 = vector.broadcast %cst_66 : f32 to vector<8x1xf32>
    %144 = arith.divf %142, %143 : vector<8x1xf32>
    %cst_67 = arith.constant 9.99999996E-13 : f32
    %145 = vector.broadcast %cst_67 : f32 to vector<8x1xf32>
    %146 = arith.addf %144, %145 : vector<8x1xf32>
    %147 = math.rsqrt %146 : vector<8x1xf32>
    %148 = vector.broadcast %147 : vector<8x1xf32> to vector<8x32xf32>
    %149 = arith.mulf %139, %148 : vector<8x32xf32>
    %150 = vector.broadcast %131 : vector<1x32xf32> to vector<8x32xf32>
    %151 = arith.mulf %149, %150 : vector<8x32xf32>
    %152 = vector.broadcast %133 : vector<1x32xf32> to vector<8x32xf32>
    %153 = arith.addf %151, %152 : vector<8x32xf32>
    %154 = arith.truncf %153 : vector<8x32xf32> to vector<8x32xbf16>
    %c0_68 = arith.constant 0 : index
    %c0_69 = arith.constant 0 : index
    %c0_70 = arith.constant 0 : index
    %155 = vector.load %arg15[%c0_68, %c0_69, %c0_70] : memref<1x32x64xbf16, #tpu.memory_space<vmem>>, vector<1x32x64xbf16>
    %156 = vector.shape_cast %155 : vector<1x32x64xbf16> to vector<32x64xbf16>
    %cst_71 = arith.constant dense<0.000000e+00> : vector<8x64xf32>
    %157 = tpu.matmul %154, %156, %cst_71 {dimension_numbers = #tpu.dot_dimension_numbers<[1], [0], [0], [1], [0, 0, 1, 1], [], []>} : vector<8x32xbf16>, vector<32x64xbf16>, vector<8x64xf32> -> vector<8x64xf32>
    %c0_72 = arith.constant 0 : index
    %c0_73 = arith.constant 0 : index
    %c0_74 = arith.constant 0 : index
    %158 = vector.load %arg16[%c0_72, %c0_73, %c0_74] : memref<1x1x64xf32, #tpu.memory_space<vmem>>, vector<1x1x64xf32>
    %159 = vector.shape_cast %158 : vector<1x1x64xf32> to vector<1x64xf32>
    %160 = vector.broadcast %159 : vector<1x64xf32> to vector<8x64xf32>
    %161 = arith.addf %157, %160 : vector<8x64xf32>
    %cst_75 = arith.constant 5.000000e-01 : f32
    %162 = vector.broadcast %cst_75 : f32 to vector<8x64xf32>
    %163 = arith.mulf %162, %161 : vector<8x64xf32>
    %cst_76 = arith.constant 0.707106769 : f32
    %164 = vector.broadcast %cst_76 : f32 to vector<8x64xf32>
    %165 = arith.mulf %161, %164 : vector<8x64xf32>
    %cst_77 = arith.constant 0.000000e+00 : f32
    %166 = vector.broadcast %cst_77 : f32 to vector<8x64xf32>
    %167 = arith.cmpf oge, %165, %166 : vector<8x64xf32>
    %cst_78 = arith.constant 1.000000e+00 : f32
    %cst_79 = arith.constant -1.000000e+00 : f32
    %168 = vector.broadcast %cst_78 : f32 to vector<8x64xf32>
    %169 = vector.broadcast %cst_79 : f32 to vector<8x64xf32>
    %170 = arith.select %167, %168, %169 : vector<8x64xi1>, vector<8x64xf32>
    %171 = math.absf %165 : vector<8x64xf32>
    %cst_80 = arith.constant 0.327591091 : f32
    %172 = vector.broadcast %cst_80 : f32 to vector<8x64xf32>
    %173 = arith.mulf %172, %171 : vector<8x64xf32>
    %cst_81 = arith.constant 1.000000e+00 : f32
    %174 = vector.broadcast %cst_81 : f32 to vector<8x64xf32>
    %175 = arith.addf %174, %173 : vector<8x64xf32>
    %cst_82 = arith.constant 1.000000e+00 : f32
    %176 = vector.broadcast %cst_82 : f32 to vector<8x64xf32>
    %177 = arith.divf %176, %175 : vector<8x64xf32>
    %cst_83 = arith.constant 1.06140542 : f32
    %178 = vector.broadcast %cst_83 : f32 to vector<8x64xf32>
    %179 = arith.mulf %177, %178 : vector<8x64xf32>
    %cst_84 = arith.constant -1.45315206 : f32
    %180 = vector.broadcast %cst_84 : f32 to vector<8x64xf32>
    %181 = arith.addf %180, %179 : vector<8x64xf32>
    %182 = arith.mulf %177, %181 : vector<8x64xf32>
    %cst_85 = arith.constant 1.42141378 : f32
    %183 = vector.broadcast %cst_85 : f32 to vector<8x64xf32>
    %184 = arith.addf %183, %182 : vector<8x64xf32>
    %185 = arith.mulf %177, %184 : vector<8x64xf32>
    %cst_86 = arith.constant -0.284496725 : f32
    %186 = vector.broadcast %cst_86 : f32 to vector<8x64xf32>
    %187 = arith.addf %186, %185 : vector<8x64xf32>
    %188 = arith.mulf %177, %187 : vector<8x64xf32>
    %cst_87 = arith.constant 0.254829586 : f32
    %189 = vector.broadcast %cst_87 : f32 to vector<8x64xf32>
    %190 = arith.addf %189, %188 : vector<8x64xf32>
    %191 = arith.mulf %177, %190 : vector<8x64xf32>
    %cst_88 = arith.constant 0.000000e+00 : f32
    %192 = vector.broadcast %cst_88 : f32 to vector<8x64xf32>
    %193 = arith.subf %192, %171 : vector<8x64xf32>
    %194 = arith.mulf %193, %171 : vector<8x64xf32>
    %195 = math.exp %194 : vector<8x64xf32>
    %196 = arith.mulf %191, %195 : vector<8x64xf32>
    %cst_89 = arith.constant 1.000000e+00 : f32
    %197 = vector.broadcast %cst_89 : f32 to vector<8x64xf32>
    %198 = arith.subf %197, %196 : vector<8x64xf32>
    %199 = arith.mulf %170, %198 : vector<8x64xf32>
    %cst_90 = arith.constant 1.000000e+00 : f32
    %200 = vector.broadcast %cst_90 : f32 to vector<8x64xf32>
    %201 = arith.addf %200, %199 : vector<8x64xf32>
    %202 = arith.mulf %163, %201 : vector<8x64xf32>
    %203 = arith.truncf %202 : vector<8x64xf32> to vector<8x64xbf16>
    %c0_91 = arith.constant 0 : index
    %c0_92 = arith.constant 0 : index
    %c0_93 = arith.constant 0 : index
    %204 = vector.load %arg17[%c0_91, %c0_92, %c0_93] : memref<1x64x32xbf16, #tpu.memory_space<vmem>>, vector<1x64x32xbf16>
    %205 = vector.shape_cast %204 : vector<1x64x32xbf16> to vector<64x32xbf16>
    %cst_94 = arith.constant dense<0.000000e+00> : vector<8x32xf32>
    %206 = tpu.matmul %203, %205, %cst_94 {dimension_numbers = #tpu.dot_dimension_numbers<[1], [0], [0], [1], [0, 0, 1, 1], [], []>} : vector<8x64xbf16>, vector<64x32xbf16>, vector<8x32xf32> -> vector<8x32xf32>
    %c0_95 = arith.constant 0 : index
    %c0_96 = arith.constant 0 : index
    %c0_97 = arith.constant 0 : index
    %207 = vector.load %arg18[%c0_95, %c0_96, %c0_97] : memref<1x1x32xf32, #tpu.memory_space<vmem>>, vector<1x1x32xf32>
    %208 = vector.shape_cast %207 : vector<1x1x32xf32> to vector<1x32xf32>
    %209 = vector.broadcast %208 : vector<1x32xf32> to vector<8x32xf32>
    %210 = arith.addf %206, %209 : vector<8x32xf32>
    %211 = arith.addf %129, %210 : vector<8x32xf32>
    %c0_98 = arith.constant 0 : index
    %c0_99 = arith.constant 0 : index
    %212 = vector.load %arg22[%c0_98, %c0_99] : memref<8x32xf32, #tpu.memory_space<vmem>>, vector<8x32xf32>
    tpu.vector_store %arg22[%c0_98, %c0_99], %211 {strides = array<i32>} : memref<8x32xf32, #tpu.memory_space<vmem>>, vector<8x32xf32>,
    %c1_i32 = arith.constant 1 : i32
    %213 = arith.cmpi eq, %arg1, %c1_i32 : i32
    %214 = arith.extui %213 : i1 to i32
    %c0_i32_100 = arith.constant 0 : i32
    %215 = arith.cmpi ne, %214, %c0_i32_100 : i32
    scf.if %215 {
      %c0_101 = arith.constant 0 : index
      %c0_102 = arith.constant 0 : index
      %216 = vector.load %arg19[%c0_101, %c0_102] : memref<1x32xf32, #tpu.memory_space<vmem>>, vector<1x32xf32>
      %c0_103 = arith.constant 0 : index
      %c0_104 = arith.constant 0 : index
      %217 = vector.load %arg20[%c0_103, %c0_104] : memref<1x32xf32, #tpu.memory_space<vmem>>, vector<1x32xf32>
      %cst_105 = arith.constant dense<0.000000e+00> : vector<8xf32>
      %218 = vector.multi_reduction <add>, %211, %cst_105 [1] : vector<8x32xf32> to vector<8xf32>
      %219 = vector.shape_cast %218 : vector<8xf32> to vector<8x1xf32>
      %cst_106 = arith.constant 3.200000e+01 : f32
      %220 = vector.broadcast %cst_106 : f32 to vector<8x1xf32>
      %221 = arith.divf %219, %220 : vector<8x1xf32>
      %222 = vector.broadcast %221 : vector<8x1xf32> to vector<8x32xf32>
      %223 = arith.subf %211, %222 : vector<8x32xf32>
      %224 = arith.mulf %223, %223 : vector<8x32xf32>
      %cst_107 = arith.constant dense<0.000000e+00> : vector<8xf32>
      %225 = vector.multi_reduction <add>, %224, %cst_107 [1] : vector<8x32xf32> to vector<8xf32>
      %226 = vector.shape_cast %225 : vector<8xf32> to vector<8x1xf32>
      %cst_108 = arith.constant 3.200000e+01 : f32
      %227 = vector.broadcast %cst_108 : f32 to vector<8x1xf32>
      %228 = arith.divf %226, %227 : vector<8x1xf32>
      %cst_109 = arith.constant 9.99999996E-13 : f32
      %229 = vector.broadcast %cst_109 : f32 to vector<8x1xf32>
      %230 = arith.addf %228, %229 : vector<8x1xf32>
      %231 = math.rsqrt %230 : vector<8x1xf32>
      %232 = vector.broadcast %231 : vector<8x1xf32> to vector<8x32xf32>
      %233 = arith.mulf %223, %232 : vector<8x32xf32>
      %234 = vector.broadcast %216 : vector<1x32xf32> to vector<8x32xf32>
      %235 = arith.mulf %233, %234 : vector<8x32xf32>
      %236 = vector.broadcast %217 : vector<1x32xf32> to vector<8x32xf32>
      %237 = arith.addf %235, %236 : vector<8x32xf32>
      %c0_110 = arith.constant 0 : index
      %c0_111 = arith.constant 0 : index
      %c0_112 = arith.constant 0 : index
      %238 = vector.load %arg21[%c0_110, %c0_111, %c0_112] : memref<1x8x32xf32, #tpu.memory_space<vmem>>, vector<1x8x32xf32>
      %239 = vector.shape_cast %238 : vector<1x8x32xf32> to vector<8x32xf32>
      %240 = vector.shape_cast %237 : vector<8x32xf32> to vector<1x8x32xf32>
      tpu.vector_store %arg21[%c0_110, %c0_111, %c0_112], %240 {strides = array<i32>} : memref<1x8x32xf32, #tpu.memory_space<vmem>>, vector<1x8x32xf32>,
    } else {
    }
    return
  }
  func.func @transform_0(%arg0: i32, %arg1: i32) -> (i32, i32, i32) {
    %c0_i32 = arith.constant 0 : i32
    %c0_i32_0 = arith.constant 0 : i32
    %c0_i32_1 = arith.constant 0 : i32
    return %arg0, %c0_i32, %c0_i32_0 : i32, i32, i32
  }
  func.func @transform_1(%arg0: i32, %arg1: i32) -> (i32, i32) {
    %c0_i32 = arith.constant 0 : i32
    %c0_i32_0 = arith.constant 0 : i32
    %c0_i32_1 = arith.constant 0 : i32
    return %c0_i32, %c0_i32_0 : i32, i32
  }
  func.func @transform_2(%arg0: i32, %arg1: i32) -> (i32, i32) {
    %c0_i32 = arith.constant 0 : i32
    %c0_i32_0 = arith.constant 0 : i32
    %c0_i32_1 = arith.constant 0 : i32
    return %c0_i32, %c0_i32_0 : i32, i32
  }
  func.func @transform_3(%arg0: i32, %arg1: i32) -> (i32, i32) {
    %c0_i32 = arith.constant 0 : i32
    %c0_i32_0 = arith.constant 0 : i32
    %c0_i32_1 = arith.constant 0 : i32
    return %c0_i32, %c0_i32_0 : i32, i32
  }
  func.func @transform_4(%arg0: i32, %arg1: i32) -> (i32, i32) {
    %c0_i32 = arith.constant 0 : i32
    %c0_i32_0 = arith.constant 0 : i32
    %c0_i32_1 = arith.constant 0 : i32
    return %c0_i32, %c0_i32_0 : i32, i32
  }
  func.func @transform_5(%arg0: i32, %arg1: i32) -> (i32, i32, i32) {
    %c0_i32 = arith.constant 0 : i32
    %c0_i32_0 = arith.constant 0 : i32
    %c0_i32_1 = arith.constant 0 : i32
    return %arg1, %c0_i32, %c0_i32_0 : i32, i32, i32
  }
  func.func @transform_6(%arg0: i32, %arg1: i32) -> (i32, i32, i32) {
    %c0_i32 = arith.constant 0 : i32
    %c0_i32_0 = arith.constant 0 : i32
    %c0_i32_1 = arith.constant 0 : i32
    return %arg1, %c0_i32, %c0_i32_0 : i32, i32, i32
  }
  func.func @transform_7(%arg0: i32, %arg1: i32) -> (i32, i32, i32) {
    %c0_i32 = arith.constant 0 : i32
    %c0_i32_0 = arith.constant 0 : i32
    %c0_i32_1 = arith.constant 0 : i32
    return %arg1, %c0_i32, %c0_i32_0 : i32, i32, i32
  }
  func.func @transform_8(%arg0: i32, %arg1: i32) -> (i32, i32, i32) {
    %c0_i32 = arith.constant 0 : i32
    %c0_i32_0 = arith.constant 0 : i32
    %c0_i32_1 = arith.constant 0 : i32
    return %arg1, %c0_i32, %c0_i32_0 : i32, i32, i32
  }
  func.func @transform_9(%arg0: i32, %arg1: i32) -> (i32, i32, i32) {
    %c0_i32 = arith.constant 0 : i32
    %c0_i32_0 = arith.constant 0 : i32
    %c0_i32_1 = arith.constant 0 : i32
    return %arg1, %c0_i32, %c0_i32_0 : i32, i32, i32
  }
  func.func @transform_10(%arg0: i32, %arg1: i32) -> (i32, i32, i32) {
    %c0_i32 = arith.constant 0 : i32
    %c0_i32_0 = arith.constant 0 : i32
    %c0_i32_1 = arith.constant 0 : i32
    return %arg1, %c0_i32, %c0_i32_0 : i32, i32, i32
  }
  func.func @transform_11(%arg0: i32, %arg1: i32) -> (i32, i32, i32) {
    %c0_i32 = arith.constant 0 : i32
    %c0_i32_0 = arith.constant 0 : i32
    %c0_i32_1 = arith.constant 0 : i32
    return %arg1, %c0_i32, %c0_i32_0 : i32, i32, i32
  }
  func.func @transform_12(%arg0: i32, %arg1: i32) -> (i32, i32, i32) {
    %c0_i32 = arith.constant 0 : i32
    %c0_i32_0 = arith.constant 0 : i32
    %c0_i32_1 = arith.constant 0 : i32
    return %arg1, %c0_i32, %c0_i32_0 : i32, i32, i32
  }
  func.func @transform_13(%arg0: i32, %arg1: i32) -> (i32, i32, i32) {
    %c0_i32 = arith.constant 0 : i32
    %c0_i32_0 = arith.constant 0 : i32
    %c0_i32_1 = arith.constant 0 : i32
    return %arg1, %c0_i32, %c0_i32_0 : i32, i32, i32
  }
  func.func @transform_14(%arg0: i32, %arg1: i32) -> (i32, i32, i32) {
    %c0_i32 = arith.constant 0 : i32
    %c0_i32_0 = arith.constant 0 : i32
    %c0_i32_1 = arith.constant 0 : i32
    return %arg1, %c0_i32, %c0_i32_0 : i32, i32, i32
  }
  func.func @transform_15(%arg0: i32, %arg1: i32) -> (i32, i32, i32) {
    %c0_i32 = arith.constant 0 : i32
    %c0_i32_0 = arith.constant 0 : i32
    %c0_i32_1 = arith.constant 0 : i32
    return %arg1, %c0_i32, %c0_i32_0 : i32, i32, i32
  }
  func.func @transform_16(%arg0: i32, %arg1: i32) -> (i32, i32, i32) {
    %c0_i32 = arith.constant 0 : i32
    %c0_i32_0 = arith.constant 0 : i32
    %c0_i32_1 = arith.constant 0 : i32
    return %arg1, %c0_i32, %c0_i32_0 : i32, i32, i32
  }
  func.func @transform_17(%arg0: i32, %arg1: i32) -> (i32, i32) {
    %c0_i32 = arith.constant 0 : i32
    %c0_i32_0 = arith.constant 0 : i32
    %c0_i32_1 = arith.constant 0 : i32
    return %c0_i32, %c0_i32_0 : i32, i32
  }
  func.func @transform_18(%arg0: i32, %arg1: i32) -> (i32, i32) {
    %c0_i32 = arith.constant 0 : i32
    %c0_i32_0 = arith.constant 0 : i32
    %c0_i32_1 = arith.constant 0 : i32
    return %c0_i32, %c0_i32_0 : i32, i32
  }
  func.func @transform_19(%arg0: i32, %arg1: i32) -> (i32, i32, i32) {
    %c0_i32 = arith.constant 0 : i32
    %c0_i32_0 = arith.constant 0 : i32
    %c0_i32_1 = arith.constant 0 : i32
    return %arg0, %c0_i32, %c0_i32_0 : i32, i32, i32
  }
}

</mosaic_0001>

<bundles_post_ra>
// kernel: tpu_custom_call.1
= control target key start
LH: loop header
LB: loop body
LE: loop exit
PB: predicated region body
PF: predicated region fallthrough
CT: control target
= control target key end

     0   :  { %s3635_s0 = inlined_call_operand.vmem [shape: f32[2,4,768], index: 0, kind: input, shape index: {}]   ;;  %s3636_s1 = inlined_call_operand.vmem [shape: bf16[768,32], index: 1, kind: input, shape index: {}]   ;;  %s3637_s2 = inlined_call_operand.vmem [shape: f32[1,32], index: 2, kind: input, shape index: {}]   ;;  %s3638_s3 = inlined_call_operand.vmem [shape: f32[1,32], index: 3, kind: input, shape index: {}]   ;;  %s3639_s4 = inlined_call_operand.vmem [shape: f32[8,32], index: 4, kind: input, shape index: {}]   ;;  %s3640_s5 = inlined_call_operand.vmem [shape: f32[2,1,32], index: 5, kind: input, shape index: {}]   ;;  %s3641_s6 = inlined_call_operand.vmem [shape: f32[2,1,32], index: 6, kind: input, shape index: {}]   ;;  %s3642_s7 = inlined_call_operand.vmem [shape: bf16[2,32,96], index: 7, kind: input, shape index: {}]   ;;  %s3643_s8 = inlined_call_operand.vmem [shape: f32[2,1,96], index: 8, kind: input, shape index: {}]   ;;  %s3644_s9 = inlined_call_operand.vmem [shape: bf16[2,32,32], index: 9, kind: input, shape index: {}]   ;;  %s3645_s10 = inlined_call_operand.vmem [shape: f32[2,1,32], index: 10, kind: input, shape index: {}]   ;;  %s3646_s11 = inlined_call_operand.vmem [shape: f32[2,1,32], index: 11, kind: input, shape index: {}]   ;;  %s3647_s12 = inlined_call_operand.vmem [shape: f32[2,1,32], index: 12, kind: input, shape index: {}]   ;;  %s3648_s13 = inlined_call_operand.vmem [shape: bf16[2,32,64], index: 13, kind: input, shape index: {}]   ;;  %s3649_s14 = inlined_call_operand.vmem [shape: f32[2,1,64], index: 14, kind: input, shape index: {}]   ;;  %s3650_s15 = inlined_call_operand.vmem [shape: bf16[2,64,32], index: 15, kind: input, shape index: {}]   ;;  %s3651_s16 = inlined_call_operand.vmem [shape: f32[2,1,32], index: 16, kind: input, shape index: {}]   ;;  %s3652_s17 = inlined_call_operand.vmem [shape: f32[1,32], index: 17, kind: input, shape index: {}]   ;;  %s3653_s18 = inlined_call_operand.vmem [shape: f32[1,32], index: 18, kind: input, shape index: {}]   ;;  %s3654_s19 = inlined_call_operand.hbm [shape: f32[2,8,32], index: 19, kind: output, shape index: {}]  }
   0x1   :  { %3672 = sst [smem:[#allocation20_spill]] %s3635_s0 }
   0x2   :  { %3673 = sst [smem:[#allocation21_spill]] %s3636_s1 }
   0x3   :  { %3674 = sst [smem:[#allocation22_spill]] %s3637_s2 }
   0x4   :  { %3675 = sst [smem:[#allocation23_spill]] %s3638_s3 }
   0x5   :  { %3676 = sst [smem:[#allocation24_spill]] %s3639_s4 }
   0x6   :  { %3677 = sst [smem:[#allocation25_spill]] %s3641_s6 }
   0x7   :  { %3678 = sst [smem:[#allocation26_spill]] %s3642_s7 }
   0x8   :  { %3679 = sst [smem:[#allocation27_spill]] %s3644_s9 }
   0x9   :  { %3680 = sst [smem:[#allocation28_spill]] %s3652_s17 }
   0xa   :  { %3681 = sst [smem:[#allocation29_spill]] %s3653_s18 }
   0xb   :  { %3682 = sst [smem:[#allocation30_spill]] %s3654_s19 }
   0xc   :  { %24 = vsyncpa [#allocation5], 0 }
   0xd   :  { %26 = vsyncpa [#allocation5 + $0x1], 0  ;;  %s3115_s0 = smov 0   ;;  %s3117_s30 = smov 0  }
   0xe   :  { %s3119_s20 = smov 0   ;;  %s3121_s21 = smov 0  }
   0xf   :  { %s3123_s1 = smov 0   ;;  %s3125_s22 = smov 0  }
  0x10   :  { %s3127_s2 = smov 0   ;;  %s3129_s23 = smov 0  }
  0x11 LB: > { %3683 = sst [smem:[#allocation7_spill]] %s2966_s0  ;;  %s2437_s24 = sadd.s32 4294967295, %s2994_s23   ;;  %s2994_s23 = sphi %s3129_s23, %s32_s23   ;;  %s2990_s2 = sphi %s3127_s2, %s3733_s2   ;;  %s2986_s22 = sphi %s3125_s22, %s3732_s22   ;;  %s2982_s1 = sphi %s3123_s1, %s3731_s1   ;;  %s2978_s21 = sphi %s3121_s21, %s3730_s21   ;;  %s2974_s20 = sphi %s3119_s20, %s3729_s20   ;;  %s2970_s30 = sphi %s3117_s30, %s3728_s30   ;;  %s2966_s0 = sphi %s3115_s0, %s3727_s0  }
  0x12   : > { %3684 = sst [smem:[#allocation8_spill]] %s2970_s30  ;;  %s2438_s25 = sadd.s32 4294967294, %s2994_s23  }
  0x13   : > { %3685 = sst [smem:[#allocation9_spill]] %s2974_s20  ;;  %s41_s3 = sadd.s32 1, %s2986_s22 }
  0x14   : > { %3686 = sst [smem:[#allocation10_spill]] %s2978_s21  ;;  %p42_p0 = scmp.ge.s32.totalorder %s41_s3, 2 }
  0x15   : > { %3687 = sst [smem:[#allocation11_spill]] %s2982_s1  ;;  %s44_s26 = sadd.s32 1, %s2990_s2 }
  0x16   : > { %3688 = sst [smem:[#allocation12_spill]] %s2986_s22  ;;  %p525_p1 = scmp.ne.s32.totalorder %s2974_s20, %s2970_s30 }
  0x17   : > { %3689 = sst [smem:[#allocation13_spill]] %s2990_s2  ;;  %p526_p2 = scmp.eq.s32.totalorder %s2437_s24, 3 }
  0x18   : > { %3690 = sst [smem:[#allocation14_spill]] %s2994_s23  ;;  %s3735_s3 = smov (%p42_p0, %s41_s3), 0 }
  0x19   : > { %3691 = sst [smem:[#allocation15_spill]] %s3735_s3  ;;  %s3737_s26 = smov (!%p42_p0, %s44_s26), %s2990_s2 }
  0x1a   : > { %p3164_p3 = por %p526_p2, %p525_p1  ;;  %p531_p4 = scmp.ne.s32.totalorder %s2970_s30, %s2966_s0 }
  0x1b   : > { %p46_p5 = scmp.ge.s32.totalorder %s3737_s26, 2  ;;  %p532_p6 = scmp.eq.s32.totalorder %s2438_s25, 3 }
  0x1c   : > { %s3692_s27 = scalar_select %p3164_p3, 1, 0 }
  0x1d   : > { %p2441_p7 = scmp.ge.s32.totalorder %s2994_s23, 1  ;;  %p656_p8 = scmp.lt.s32.totalorder %s2994_s23, 5 }
  0x1e   : > { %3693 = sst [smem:[#allocation16_spill]] %s3692_s27  ;;  %s3739_s26 = smov (%p46_p5, %s3737_s26), 0 }
  0x1f   : > { %3694 = sst [smem:[#allocation17_spill]] %s3739_s26  ;;  %p3174_p9 = por %p532_p6, %p531_p4 }
  0x20   : > { %p657_p10 = pnand %p2441_p7, %p656_p8  ;;  %s512_s29 = ssub.s32 %s2990_s2, %s3739_s26 }
  0x21   : > { %s3695_s28 = scalar_select %p3174_p9, 1, 0 }
  0x22   : > { %s515_s24 = sadd.s32 1, %s2974_s20  ;;  %p513_p11 = scmp.eq.s32.totalorder %s512_s29, 0 }
  0x23   : > { %3696 = sst [smem:[#allocation18_spill]] %s3695_s28  ;;  %660 = sbr.rel (%p657_p10) target bundleno = 3280 (0xcd0), region = 96 }
  0x24   : > { %s3182_s3 = scalar_select %p513_p11, %s2974_s20, %s515_s24  }
  0x25   : > { %s3660_s25 = sand.u32 (!%p657_p10), 1, %s2970_s30   ;;  %p756_p12 = scmp.lt.s32.totalorder (!%p657_p10), %s2982_s1, 1 }
  0x26   : > { %3697 = sst [smem:[#allocation19_spill]] %s3182_s3  ;;  %s3188_s22 = sshll.u32 (!%p657_p10), %s3660_s25, 3 }
  0x27   : > { %p761_p13 = scmp.lt.s32.totalorder (!%p657_p10), %s2978_s21, 1  ;;  %s3699_s27 = sld [smem:[#allocation20_spill]] (!%p657_p10) }
  0x28   : > { %s3700_s7 = sld [smem:[#allocation26_spill]] (!%p657_p10)  ;;  %s3701_s9 = sld [smem:[#allocation27_spill]] (!%p657_p10) }
  0x29   : > { %s755_s17 = scalar_lea.vmem (!%p657_p10), [#allocation4], %s3188_s22  ;;  %s3702_s18 = sld [smem:[#allocation10_spill]] (!%p657_p10) }
  0x2a   : > { %s757_s28 = scalar_select %p756_p12, %s2982_s1, 1 }
  0x2b   : > { %s3193_s0 = scalar_select %p761_p13, %s2978_s21, 1 }
  0x2c   : > { %s2723_s29 = smul.u32 24, %s757_s28 }
  0x2d   : > { %s2539_s1 = sshll.u32 %s3193_s0, 4  ;;  %s796_s26 = scalar_lea.vmem %s3649_s14, %s3193_s0 }
  0x2e   : > { %s3206_s30 = scalar_lea.vmem %s3699_s27, %s2723_s29  ;;  %s3212_s4 = scalar_lea.vmem %s3700_s7, %s2539_s1 }
  0x2f   : > { %s3221_s2 = scalar_lea.vmem %s3701_s9, %s2539_s1  ;;  %s3238_s28 = scalar_lea.vmem %s3648_s13, %s2539_s1 }
  0x30   : > { %s2542_s9 = sshll.u32 %s3193_s0, 5  ;;  %s804_s19 = scalar_lea.vmem %s3651_s16, %s3193_s0 }
  0x31   : > { %s3252_s29 = scalar_lea.vmem %s3650_s15, %s2542_s9  ;;  %p2452_p0 = scmp.ne.s32.totalorder %s3702_s18, 0 }
  0x32   : > { %s3703_s21 = sld [smem:[#allocation21_spill]] (!%p2452_p0)  ;;  %v810_v31 = vld [vmem:[%s3206_s30] sm:$0xff] (!%p2452_p0)  ;;  %v811_v36 = vld [vmem:[%s3206_s30 + $0x8] sm:$0xff] (!%p2452_p0)  ;;  %v812_v49 = vld [vmem:[%s3206_s30 + $0x10] sm:$0xff] (!%p2452_p0)  ;;  %vm1339_vm0 = vcmask (!%p2452_p0), 261120   ;;  %s3705_s18 = sld [smem:[#allocation23_spill]] (!%p2452_p0) }
  0x33   : > { %809 = sbr.rel (%p2452_p0) target bundleno = 341 (0x155), region = 100  ;;  %v816_v32 = vcombine.high (!%p2452_p0), %v810_v31, %v810_v31  ;;  %v822_v34 = vpack.c.bf16 (!%p2452_p0), %v810_v31, %v810_v31  ;;  %v817_v38 = vcombine.high (!%p2452_p0), %v811_v36, %v811_v36  ;;  %v824_v40 = vpack.c.bf16 (!%p2452_p0), %v811_v36, %v811_v36  ;;  %s3706_s1 = sld [smem:[#allocation24_spill]] (!%p2452_p0) }
  0x34   : > { %v818_v50 = vcombine.high (!%p2452_p0), %v812_v49, %v812_v49  ;;  %v826_v59 = vpack.c.bf16 (!%p2452_p0), %v812_v49, %v812_v49  ;;  %v2996_v62 = vmov (!%p2452_p0), 0.0   ;;  %vm1344_vm1 = vcmask (!%p2452_p0), 253952   ;;  %s3708_s20 = sld [smem:[#allocation22_spill]] (!%p2452_p0) }
  0x35   : > { %v823_v37 = vpack.c.bf16 (!%p2452_p0), %v816_v32, %v816_v32  ;;  %v825_v42 = vpack.c.bf16 (!%p2452_p0), %v817_v38, %v817_v38  ;;  %1340 = vst.msk [vmem:[#allocation2] sm:$0xff] (!%p2452_p0), %vm1339_vm0, %v2996_v62  ;;  %vm1348_vm2 = vcmask (!%p2452_p0), 257024  }
  0x36   : > { %v827_v53 = vpack.c.bf16 (!%p2452_p0), %v818_v50, %v818_v50 }
  0x37   : > { %1251 = vmatprep.mubr.bf16.mxu0 (!%p2452_p0), %v823_v37  ;;  %1291 = vmatprep.mubr.bf16.mxu1 (!%p2452_p0), %v825_v42 }
  0x38   : > { %s3704_s7 = smov (!%p2452_p0), %s3703_s21  ;;  %v2813_v0 = vld [vmem:[%s3703_s21 + $0x40] sm:$0xff] (!%p2452_p0)  }
  0x39   : > { %v2814_v1 = vld [vmem:[%s3704_s7] sm:$0xff] (!%p2452_p0)   ;;  %2543 = vmatprep.subr.bf16.mxu0 (!%p2452_p0), %v2813_v0  ;;  %v2817_v4 = vld [vmem:[%s3704_s7 + $0x48] sm:$0xff] (!%p2452_p0)   ;;  %v2821_v8 = vld [vmem:[%s3704_s7 + $0x50] sm:$0xff] (!%p2452_p0)   ;;  %s3707_s25 = smov (!%p2452_p0), %s3706_s1 }
  0x3a   : > { %v2815_v2 = vld [vmem:[%s3704_s7 + $0xc0] sm:$0xff]   ;;  %2544 = vmatpush3.bf16.msra.mxu0 %v2814_v1  ;;  %v2818_v5 = vld [vmem:[%s3704_s7 + $0x8] sm:$0xff]   ;;  %v2822_v9 = vld [vmem:[%s3704_s7 + $0x10] sm:$0xff]  }
  0x3b   : > { %v2816_v3 = vld [vmem:[%s3704_s7 + $0x80] sm:$0xff]   ;;  %2565 = vmatprep.subr.bf16.mxu1 %v2815_v2  ;;  %2545 = vmatprep.subr.bf16.mxu0 %v2817_v4  ;;  %v2819_v6 = vld [vmem:[%s3704_s7 + $0xc8] sm:$0xff]   ;;  %v2823_v10 = vld [vmem:[%s3704_s7 + $0xd0] sm:$0xff]  }
  0x3c   : > { %2566 = vmatpush3.bf16.msra.mxu1 %v2816_v3  ;;  %v2820_v7 = vld [vmem:[%s3704_s7 + $0x88] sm:$0xff]   ;;  %v2824_v11 = vld [vmem:[%s3704_s7 + $0x90] sm:$0xff]   ;;  %v2825_v12 = vld [vmem:[%s3704_s7 + $0x58] sm:$0xff]  }
  0x3d   : > { %2567 = vmatprep.subr.bf16.mxu1 %v2819_v6  ;;  %v2826_v13 = vld [vmem:[%s3704_s7 + $0x18] sm:$0xff]   ;;  %v2829_v16 = vld [vmem:[%s3704_s7 + $0x60] sm:$0xff]   ;;  %v2833_v20 = vld [vmem:[%s3704_s7 + $0x68] sm:$0xff]  }
  0x3e   : > { %2546 = vmatpush3.bf16.msra.mxu0 %v2818_v5  ;;  %v2827_v14 = vld [vmem:[%s3704_s7 + $0xd8] sm:$0xff]   ;;  %v2830_v17 = vld [vmem:[%s3704_s7 + $0x20] sm:$0xff]   ;;  %v2834_v21 = vld [vmem:[%s3704_s7 + $0x28] sm:$0xff]  }
  0x3f   : > { %2547 = vmatprep.subr.bf16.mxu0 %v2821_v8  ;;  %v2828_v15 = vld [vmem:[%s3704_s7 + $0x98] sm:$0xff]   ;;  %v2831_v18 = vld [vmem:[%s3704_s7 + $0xe0] sm:$0xff]   ;;  %v2835_v22 = vld [vmem:[%s3704_s7 + $0xe8] sm:$0xff]  }
  0x40   : > { %2568 = vmatpush3.bf16.msra.mxu1 %v2820_v7  ;;  %v2832_v19 = vld [vmem:[%s3704_s7 + $0xa0] sm:$0xff]   ;;  %v2836_v23 = vld [vmem:[%s3704_s7 + $0xa8] sm:$0xff]   ;;  %v2837_v24 = vld [vmem:[%s3704_s7 + $0x70] sm:$0xff]  }
  0x41   : > { %2569 = vmatprep.subr.bf16.mxu1 %v2823_v10  ;;  %v2838_v25 = vld [vmem:[%s3704_s7 + $0x30] sm:$0xff]   ;;  %v2841_v28 = vld [vmem:[%s3704_s7 + $0x78] sm:$0xff]   ;;  %v2846_v35 = vld [vmem:[%s3704_s7 + $0x140] sm:$0xff]  }
  0x42   : > { %2548 = vmatpush3.bf16.msra.mxu0 %v2822_v9  ;;  %v2839_v26 = vld [vmem:[%s3704_s7 + $0xf0] sm:$0xff]   ;;  %v2842_v29 = vld [vmem:[%s3704_s7 + $0x38] sm:$0xff]   ;;  %v2848_v39 = vld [vmem:[%s3704_s7 + $0x100] sm:$0xff]  }
  0x43   : > { %2549 = vmatprep.subr.bf16.mxu0 %v2825_v12  ;;  %v2840_v27 = vld [vmem:[%s3704_s7 + $0xb0] sm:$0xff]   ;;  %v2843_v30 = vld [vmem:[%s3704_s7 + $0xf8] sm:$0xff]   ;;  %v2849_v41 = vld [vmem:[%s3704_s7 + $0x148] sm:$0xff]  }
  0x44   : > { %2570 = vmatpush3.bf16.msra.mxu1 %v2824_v11  ;;  %v2845_v33 = vld [vmem:[%s3704_s7 + $0xb8] sm:$0xff]   ;;  %v2850_v43 = vld [vmem:[%s3704_s7 + $0x108] sm:$0xff]   ;;  %v2851_v44 = vld [vmem:[%s3704_s7 + $0x150] sm:$0xff]  }
  0x45   : > { %2571 = vmatprep.subr.bf16.mxu1 %v2827_v14  ;;  %v2852_v45 = vld [vmem:[%s3704_s7 + $0x110] sm:$0xff]   ;;  %v2853_v46 = vld [vmem:[%s3704_s7 + $0x158] sm:$0xff]   ;;  %v2855_v48 = vld [vmem:[%s3704_s7 + $0x160] sm:$0xff]  }
  0x46   : > { %2550 = vmatpush3.bf16.msra.mxu0 %v2826_v13  ;;  %v2854_v47 = vld [vmem:[%s3704_s7 + $0x118] sm:$0xff]   ;;  %v2856_v51 = vld [vmem:[%s3704_s7 + $0x120] sm:$0xff]   ;;  %v2857_v52 = vld [vmem:[%s3704_s7 + $0x168] sm:$0xff]  }
  0x47   : > { %2551 = vmatprep.subr.bf16.mxu0 %v2829_v16  ;;  %v2858_v54 = vld [vmem:[%s3704_s7 + $0x128] sm:$0xff]   ;;  %v2859_v55 = vld [vmem:[%s3704_s7 + $0x170] sm:$0xff]   ;;  %v2861_v57 = vld [vmem:[%s3704_s7 + $0x178] sm:$0xff]  }
  0x48   : > { %2572 = vmatpush3.bf16.msra.mxu1 %v2828_v15  ;;  %v2860_v56 = vld [vmem:[%s3704_s7 + $0x130] sm:$0xff]   ;;  %v2862_v58 = vld [vmem:[%s3704_s7 + $0x138] sm:$0xff]   ;;  %v1341_v60 = vld [vmem:[%s3705_s18] sm:$0x1] }
  0x49   : > { %2573 = vmatprep.subr.bf16.mxu1 %v2831_v18  ;;  %v1342_v61 = vld [vmem:[%s3706_s1] sm:$0x1] }
  0x4a   : > { %2552 = vmatpush3.bf16.msra.mxu0 %v2830_v17  ;;  %v1343_v63 = vadd.f32 %v1342_v61, %v1341_v60  ;;  %v2453_v1 = vld [vmem:[%s3708_s20] ss:$0 sm:$0xff]  ;;  %v1346_v17 = vld [vmem:[%s3707_s25 + $0x1] sm:$0xf] }
  0x4b   : > { %2553 = vmatprep.subr.bf16.mxu0 %v2833_v20 }
  0x4c   : > { %2574 = vmatpush3.bf16.msra.mxu1 %v2832_v19  ;;  %1345 = vst.msk [vmem:[#allocation2] sm:$0x1] %vm1344_vm1, %v1343_v63 }
  0x4d   : > { %2575 = vmatprep.subr.bf16.mxu1 %v2835_v22 }
  0x4e   : > { %2554 = vmatpush3.bf16.msra.mxu0 %v2834_v21 }
  0x4f   : > { %2555 = vmatprep.subr.bf16.mxu0 %v2837_v24 }
  0x50   : > { %2576 = vmatpush3.bf16.msra.mxu1 %v2836_v23 }
  0x51   : > { %2577 = vmatprep.subr.bf16.mxu1 %v2839_v26 }
  0x52   : > { %2556 = vmatpush3.bf16.msra.mxu0 %v2838_v25 }
  0x53   : > { %2557 = vmatprep.subr.bf16.mxu0 %v2841_v28 }
  0x54   : > { %2578 = vmatpush3.bf16.msra.mxu1 %v2840_v27 }
  0x55   : > { %2579 = vmatprep.subr.bf16.mxu1 %v2843_v30 }
  0x56   : > { %2558 = vmatpush3.bf16.msra.mxu0 %v2842_v29 }
  0x57   : > { %2587 = vmatprep.subr.bf16.mxu0 %v2846_v35 }
  0x58   : > { %2580 = vmatpush3.bf16.msra.mxu1 %v2845_v33 }
  0x59   : > { %1252 = vmatmul.mubr.bf16.vlgmr.msra.gmra.mrb[0].mxu0 %v822_v34 }
  0x5a   : > { %2588 = vmatpush3.bf16.msra.mxu0 %v2848_v39  ;;  %1331 = vmatprep.mubr.bf16.mxu0 %v827_v53 }
  0x5b   : > { %1292 = vmatmul.mubr.bf16.vlgmr.msra.gmra.mrb[0].mxu1 %v824_v40  ;;  %2589 = vmatprep.subr.bf16.mxu0 %v2849_v41 }
  0x5e   : > { %2590 = vmatpush3.bf16.msra.mxu0 %v2850_v43 }
  0x5f   : > { %2591 = vmatprep.subr.bf16.mxu0 %v2851_v44 }
  0x62   : > { %2592 = vmatpush3.bf16.msra.mxu0 %v2852_v45 }
  0x63   : > { %2593 = vmatprep.subr.bf16.mxu0 %v2853_v46 }
  0x66   : > { %2594 = vmatpush3.bf16.msra.mxu0 %v2854_v47 }
  0x67   : > { %2595 = vmatprep.subr.bf16.mxu0 %v2855_v48 }
  0x6a   : > { %2596 = vmatpush3.bf16.msra.mxu0 %v2856_v51 }
  0x6b   : > { %2597 = vmatprep.subr.bf16.mxu0 %v2857_v52 }
  0x6e   : > { %2598 = vmatpush3.bf16.msra.mxu0 %v2858_v54 }
  0x6f   : > { %2599 = vmatprep.subr.bf16.mxu0 %v2859_v55 }
  0x72   : > { %2600 = vmatpush3.bf16.msra.mxu0 %v2860_v56 }
  0x73   : > { %2601 = vmatprep.subr.bf16.mxu0 %v2861_v57 }
  0x76   : > { %2602 = vmatpush3.bf16.msra.mxu0 %v2862_v58 }
  0x79   : > { %1332 = vmatmul.mubr.bf16.vlgmr.msra.gmra.mrb[4].mxu0 %v826_v59 }
 0x12c   : > { %v2559_v0 = vpop.f32.mrb[0].mxu0 }
 0x12d   : > { %v2560_v2 = vpop.f32.mrb[1].mxu0 }
 0x12e   : > { %v2561_v3 = vadd.f32 %v2560_v2, %v2559_v0  ;;  %v2562_v4 = vpop.f32.mrb[2].mxu0  ;;  %v2581_v5 = vpop.f32.mrb[0].mxu1 }
 0x12f   : > { %v2563_v6 = vpop.f32.mrb[3].mxu0  ;;  %v2582_v7 = vpop.f32.mrb[1].mxu1 }
 0x130   : > { %v1254_v8 = vadd.f32 %v2561_v3, %v2453_v1  ;;  %v2583_v9 = vadd.f32 %v2582_v7, %v2581_v5  ;;  %v2584_v10 = vpop.f32.mrb[2].mxu1 }
 0x131   : > { %v2585_v11 = vpop.f32.mrb[3].mxu1 }
 0x132   : > { %v1294_v12 = vadd.f32 %v2583_v9, %v1254_v8 }
 0x14c   : > { %v2603_v13 = vpop.f32.mrb[4].mxu0 }
 0x14d   : > { %v2604_v14 = vpop.f32.mrb[5].mxu0 }
 0x14e   : > { %v2605_v15 = vadd.f32 %v2604_v14, %v2603_v13  ;;  %v2606_v16 = vpop.f32.mrb[6].mxu0 }
 0x14f   : > { %v2607_v18 = vpop.f32.mrb[7].mxu0 }
 0x150   : > { %v1334_v19 = vadd.f32 %v2605_v15, %v1294_v12 }
 0x152   : > { %v1347_v20 = vadd.f32 %v1346_v17, %v1334_v19 }
 0x154   : > { %1349 = vst.msk [vmem:[#allocation2 + $0x1] sm:$0xf] %vm1348_vm2, %v1347_v20 }
 0x155 PF: > { %vm1356_vm3 = vcmask 261120   ;;  %v2864_v28 = vld [vmem:[%s3212_s4] sm:$0xff]   ;;  %v2997_v29 = vmov 0.0   ;;  %vm2998_vm4 = vmmov 0   ;;  %v2865_v30 = vld [vmem:[%s3212_s4 + $0x8] sm:$0xff]   ;;  %s3709_s4 = scalar_lea.vmem %s3640_s5, %s3193_s0  ;;  %s3710_s30 = sld [smem:[#allocation25_spill]]  ;;  %v1351_v59 = vlaneseq }
 0x156   : > { %2639 = vmatprep.subr.bf16.mxu0 %v2997_v29  ;;  %2643 = vmatprep.mubr.msk.bf16.mxu0 %vm2998_vm4, %v2997_v29  ;;  %v2502_v35 = vld [vmem:[%s3709_s4] ss:$0 sm:$0xff]  ;;  %s3712_s20 = scalar_lea.vmem %s3643_s8, %s3193_s0  ;;  %s2999_s3 = smov 120   ;;  %vm1456_vm5 = vcmask 64512   ;;  %vm1522_vm7 = vcmask 1043456   ;;  %vm1683_vm8 = vcmask 130112  }
 0x157   : > { %2640 = vmatpush3.bf16.msra.mxu0 %v2864_v28  ;;  %2647 = vmatprep.subr.bf16.mxu1 %v2997_v29  ;;  %v2504_v41 = vld [vmem:[%s3712_s20] ss:$0 sm:$0xff]  ;;  %s3000_s9 = smov 96   ;;  %s3001_s23 = smov 88   ;;  %v1352_v60 = vand.u32 127, %v1351_v59  ;;  %vm1801_vm9 = vcmask 195712  }
 0x158   : > { %2641 = vmatprep.subr.bf16.mxu0 %v2997_v29  ;;  %2649 = vmatprep.mubr.msk.bf16.mxu1 %vm2998_vm4, %v2997_v29  ;;  %s3002_s27 = smov 80   ;;  %s3003_s4 = smov 112   ;;  %vm1919_vm10 = vcmask 261312   ;;  %vm2153_vm12 = vcmask 523264  }
 0x159   : > { %s3004_s18 = smov 72   ;;  %s3005_s6 = smov 104   ;;  %vm1353_vm6 = vcmp.lt.s32.totalorder %v1352_v60, 5 }
 0x15a   : > { %s3008_s21 = smov 48   ;;  %s3009_s24 = smov 40  }
 0x15b   : > { %v3415_v21 = vld [vmem:[#allocation2] sm:$0xff]  ;;  %2642 = vmatpush3.bf16.msra.mxu0 %v2865_v30  ;;  %s3711_s1 = scalar_lea.vmem %s3710_s30, %s3193_s0  ;;  %s3006_s30 = smov 64  }
 0x15c   : > { %v1357_v22 = vsel %vm1356_vm3, %v3415_v21, 0.0  ;;  %2653 = vmatprep.subr.bf16.mxu0 %v2997_v29  ;;  %v2503_v37 = vld [vmem:[%s3711_s1] ss:$0 sm:$0xff]  ;;  %s3007_s1 = smov 56   ;;  %s3010_s20 = smov 8  }
 0x15d   : > { %1358 = vadd.xlane.f32.xlu0 %v1357_v22 }
 0x1ea   : > { %v1359_v23 = vpop.xlane.xlu0 %1358 }
 0x1eb   : > { %v1361_v24 = vmul.f32 0.03125, %v1359_v23 }
 0x1ed   : > { %v1362_v25 = vsub.f32 %v3415_v21, %v1361_v24 }
 0x1ef   : > { %v1363_v26 = vmul.f32 %v1362_v25, %v1362_v25 }
 0x1f1   : > { %v1364_v27 = vsel %vm1356_vm3, %v1363_v26, 0.0 }
 0x1f2   : > { %1365 = vadd.xlane.f32.xlu0 %v1364_v27 }
 0x27f   : > { %v1366_v31 = vpop.xlane.xlu0 %1365 }
 0x280   : > { %v1367_v32 = vmul.f32 0.03125, %v1366_v31 }
 0x282   : > { %v1368_v33 = vadd.f32 1e-12, %v1367_v32 }
 0x284   : > { %2874 = vrsqrt.f32 %v1368_v33 }
 0x28e   : > { %v2875_v34 = vpop.eup %2874 }
 0x28f   : > { %v1370_v36 = vmul.f32 %v2875_v34, %v1362_v25 }
 0x291   : > { %v1377_v38 = vmul.f32 %v2502_v35, %v1370_v36 }
 0x293   : > { %v1384_v39 = vadd.f32 %v2503_v37, %v1377_v38 }
 0x295   : > { %v1385_v40 = vpack.c.bf16 %v1384_v39, %v1384_v39 }
 0x297   : > { %2644 = vmatmul.mubr.msk.bf16.vlgmr.msra.gmra.mrb[0].mxu0 %vm1356_vm3, %v1385_v40 }
 0x298   : > { %2655 = vmatprep.mubr.msk.bf16.mxu0 %vm2998_vm4, %v2997_v29 }
 0x36a   : > { %v1446_v42 = vpop.f32.mrb[0].mxu0 }
 0x36b   : > { %v1447_v43 = vadd.f32 %v2504_v41, %v1446_v42  ;;  %v2645_v44 = vpop.f32.mrb[1].mxu0 }
 0x36c   : > { %v1449_v45 = vpop.f32.mrb[2].mxu0 }
 0x36d   : > { %v3449_v46 = vpack.c.bf16 %v1447_v43, %v1447_v43  ;;  %v2646_v47 = vpop.f32.mrb[3].mxu0 }
 0x36f   : > { %1567 = vrot.lane.b32.xlu0 %v3449_v46, %s2999_s3  ;;  %1454 = vrot.lane.b32.xlu1 %v3449_v46, %s3000_s9  ;;  %s3011_s3 = smov 16   ;;  %s3012_s9 = smov 24  }
 0x373   : > { %1569 = vrot.lane.b32.xlu1 %v3449_v46, %s3001_s23 }
 0x377   : > { %1687 = vrot.lane.b32.xlu1 %v3449_v46, %s3002_s27  ;;  %s3713_s27 = scalar_lea.vmem %s3645_s10, %s3193_s0 }
 0x37b   : > { %1685 = vrot.lane.b32.xlu1 %v3449_v46, %s3003_s4 }
 0x37f   : > { %1805 = vrot.lane.b32.xlu1 %v3449_v46, %s3004_s18 }
 0x383   : > { %1803 = vrot.lane.b32.xlu1 %v3449_v46, %s3005_s6  ;;  %s3714_s6 = scalar_lea.vmem %s3646_s11, %s3193_s0 }
 0x3e1   : > { %v1455_v48 = vpop.permute.xlu1 %1454  ;;  %v1568_v53 = vpop.permute.xlu0 %1567 }
 0x3e2   : > { %v1461_v49 = vsel %vm1456_vm5, %v1455_v48, 0 }
 0x3e3   : > { %2648 = vmatpush3.bf16.xpose.msra.mxu1 %v1461_v49 }
 0x3e4   : > { %2659 = vmatprep.subr.bf16.mxu1 %v2997_v29 }
 0x3e5   : > { %v1570_v50 = vpop.permute.xlu1 %1569 }
 0x3e6   : > { %v1575_v51 = vsel %vm1456_vm5, %v1570_v50, 0 }
 0x3e9   : > { %v1688_v52 = vpop.permute.xlu1 %1687 }
 0x3ea   : > { %2650 = vmatmul.mubr.msk.bf16.vlgmr.msra.gmra.mrb[0].mxu1 %vm1456_vm5, %v3449_v46  ;;  %v1693_v55 = vsel %vm1456_vm5, %v1688_v52, 0 }
 0x3eb   : > { %2660 = vmatpush3.bf16.xpose.msra.mxu1 %v1575_v51  ;;  %2661 = vmatprep.mubr.msk.bf16.mxu1 %vm2998_vm4, %v2997_v29 }
 0x3ec   : > { %2671 = vmatprep.subr.bf16.mxu1 %v2997_v29 }
 0x3ed   : > { %v1686_v54 = vpop.permute.xlu1 %1685 }
 0x3f1   : > { %v1806_v56 = vpop.permute.xlu1 %1805 }
 0x3f2   : > { %2662 = vmatmul.mubr.msk.bf16.vlgmr.msra.gmra.mrb[4].mxu1 %vm1456_vm5, %v1568_v53  ;;  %v1811_v57 = vsel %vm1456_vm5, %v1806_v56, 0 }
 0x3f3   : > { %2672 = vmatpush3.bf16.xpose.msra.mxu1 %v1693_v55  ;;  %2673 = vmatprep.mubr.msk.bf16.mxu1 %vm2998_vm4, %v2997_v29 }
 0x3f4   : > { %2683 = vmatprep.subr.bf16.mxu1 %v2997_v29 }
 0x3f5   : > { %v1804_v58 = vpop.permute.xlu1 %1803 }
 0x3fa   : > { %2674 = vmatmul.mubr.msk.bf16.vlgmr.msra.gmra.mrb[8].mxu1 %vm1456_vm5, %v1686_v54 }
 0x3fb   : > { %2684 = vmatpush3.bf16.xpose.msra.mxu1 %v1811_v57  ;;  %2685 = vmatprep.mubr.msk.bf16.mxu1 %vm2998_vm4, %v2997_v29 }
 0x3fc   : > { %2695 = vmatprep.subr.bf16.mxu1 %v2997_v29 }
 0x402   : > { %2686 = vmatmul.mubr.msk.bf16.vlgmr.msra.gmra.mrb[12].mxu1 %vm1456_vm5, %v1804_v58 }
 0x403   : > { %2699 = vmatprep.mubr.msk.bf16.mxu1 %vm2998_vm4, %v2997_v29 }
 0x4bd   : > { %v1497_v61 = vpop.f32.mrb[0].mxu1 }
 0x4be   : > { %v1503_v62 = vmul.f32 0.35355338, %v1497_v61  ;;  %v2651_v63 = vpop.f32.mrb[1].mxu1 }
 0x4bf   : > { %v1500_v0 = vpop.f32.mrb[2].mxu1 }
 0x4c0   : > { %v2652_v1 = vpop.f32.mrb[3].mxu1  ;;  %v1504_v2 = vsel %vm1353_vm6, %v1503_v62, -1e+30 }
 0x4c1   : > { %v1505_v3 = vsel %vm1456_vm5, %v1504_v2, -inf }
 0x4c2   : > { %1506 = vmax.xlane.f32.xlu1 %v1505_v3 }
 0x4c5   : > { %v1611_v4 = vpop.f32.mrb[4].mxu1 }
 0x4c6   : > { %v1617_v5 = vmul.f32 0.35355338, %v1611_v4  ;;  %v2663_v6 = vpop.f32.mrb[5].mxu1 }
 0x4c7   : > { %v1614_v7 = vpop.f32.mrb[6].mxu1 }
 0x4c8   : > { %v2664_v8 = vpop.f32.mrb[7].mxu1  ;;  %v1618_v9 = vsel %vm1353_vm6, %v1617_v5, -1e+30 }
 0x4c9   : > { %v1619_v10 = vsel %vm1456_vm5, %v1618_v9, -inf }
 0x4ca   : > { %1620 = vmax.xlane.f32.xlu0 %v1619_v10 }
 0x4cd   : > { %v1729_v11 = vpop.f32.mrb[8].mxu1 }
 0x4ce   : > { %v1735_v12 = vmul.f32 0.35355338, %v1729_v11  ;;  %v2675_v13 = vpop.f32.mrb[9].mxu1 }
 0x4cf   : > { %v1732_v14 = vpop.f32.mrb[10].mxu1 }
 0x4d0   : > { %v2676_v15 = vpop.f32.mrb[11].mxu1  ;;  %v1736_v16 = vsel %vm1353_vm6, %v1735_v12, -1e+30 }
 0x4d1   : > { %v1737_v17 = vsel %vm1456_vm5, %v1736_v16, -inf  ;;  %v2866_v15 = vld [vmem:[%s3221_s2] sm:$0xff]  }
 0x4d2   : > { %1738 = vmax.xlane.f32.xlu1 %v1737_v17  ;;  %2696 = vmatpush3.bf16.msra.mxu1 %v2866_v15 }
 0x4d3   : > { %2697 = vmatprep.subr.bf16.mxu1 %v2997_v29 }
 0x4d5   : > { %v1847_v18 = vpop.f32.mrb[12].mxu1 }
 0x4d6   : > { %v1853_v19 = vmul.f32 0.35355338, %v1847_v18  ;;  %v2687_v20 = vpop.f32.mrb[13].mxu1 }
 0x4d7   : > { %v1850_v22 = vpop.f32.mrb[14].mxu1 }
 0x4d8   : > { %v2688_v23 = vpop.f32.mrb[15].mxu1  ;;  %v1854_v24 = vsel %vm1353_vm6, %v1853_v19, -1e+30 }
 0x4d9   : > { %v1855_v25 = vsel %vm1456_vm5, %v1854_v24, -inf }
 0x4da   : > { %1856 = vmax.xlane.f32.xlu0 %v1855_v25 }
 0x54f   : > { %v1507_v26 = vpop.xlane.xlu1 %1506 }
 0x550   : > { %v1508_v27 = vsub.f32 %v1504_v2, %v1507_v26 }
 0x552   : > { %v1509_v28 = vmul.f32 1.442695, %v1508_v27 }
 0x554   : > { %2876 = vpow2.f32 %v1509_v28 }
 0x557   : > { %v1621_v30 = vpop.xlane.xlu0 %1620 }
 0x558   : > { %v1622_v31 = vsub.f32 %v1618_v9, %v1621_v30 }
 0x55a   : > { %v1623_v32 = vmul.f32 1.442695, %v1622_v31 }
 0x55c   : > { %2878 = vpow2.f32 %v1623_v32  ;;  %v2516_v32 = vld [vmem:[%s3713_s27] ss:$0 sm:$0xff] }
 0x55e   : > { %v2877_v33 = vpop.eup %2876 }
 0x55f   : > { %v1511_v34 = vsel %vm1456_vm5, %v2877_v33, 0.0  ;;  %v1739_v42 = vpop.xlane.xlu1 %1738 }
 0x560   : > { %1512 = vadd.xlane.f32.xlu1 %v1511_v34  ;;  %v1740_v43 = vsub.f32 %v1736_v16, %v1739_v42  ;;  %v2867_v16 = vld [vmem:[%s3221_s2 + $0x8] sm:$0xff]  }
 0x561   : > { %2698 = vmatpush3.bf16.msra.mxu1 %v2867_v16 }
 0x562   : > { %v1741_v44 = vmul.f32 1.442695, %v1740_v43  ;;  %2711 = vmatprep.subr.bf16.mxu1 %v2997_v29 }
 0x566   : > { %v2879_v35 = vpop.eup %2878 }
 0x567   : > { %v1857_v36 = vpop.xlane.xlu0 %1856  ;;  %v1625_v37 = vsel %vm1456_vm5, %v2879_v35, 0.0 }
 0x568   : > { %v1858_v38 = vsub.f32 %v1854_v24, %v1857_v36  ;;  %1626 = vadd.xlane.f32.xlu0 %v1625_v37 }
 0x56a   : > { %v1859_v39 = vmul.f32 1.442695, %v1858_v38 }
 0x56c   : > { %2880 = vpow2.f32 %v1859_v39 }
 0x56d   : > { %2882 = vpow2.f32 %v1741_v44 }
 0x571   : > { %1517 = vrot.lane.b32.xlu1 %v3449_v46, %s3006_s30 }
 0x576   : > { %v2881_v40 = vpop.eup %2880 }
 0x577   : > { %v1861_v41 = vsel %vm1456_vm5, %v2881_v40, 0.0  ;;  %v2883_v45 = vpop.eup %2882 }
 0x578   : > { %1862 = vadd.xlane.f32.xlu0 %v1861_v41  ;;  %v1743_v47 = vsel %vm1456_vm5, %v2883_v45, 0.0 }
 0x58e   : > { %1631 = vrot.lane.b32.xlu0 %v3449_v46, %s3007_s1 }
 0x595   : > { %1744 = vadd.xlane.f32.xlu1 %v1743_v47 }
 0x5a6   : > { %1749 = vrot.lane.b32.xlu1 %v3449_v46, %s3008_s21 }
 0x5aa   : > { %1867 = vrot.lane.b32.xlu1 %v3449_v46, %s3009_s24 }
 0x5ed   : > { %v1513_v48 = vpop.xlane.xlu1 %1512 }
 0x5ee   : > { %2884 = vrcp.f32 %v1513_v48 }
 0x5f1   : > { %v1518_v49 = vpop.permute.xlu1 %1517 }
 0x5f2   : > { %v1524_v50 = vsel %vm1522_vm7, %v1518_v49, 0 }
 0x5f3   : > { %2654 = vmatpush3.bf16.msra.mxu0 %v1524_v50 }
 0x5f4   : > { %2665 = vmatprep.subr.bf16.mxu0 %v2997_v29 }
 0x5f5   : > { %v1627_v52 = vpop.xlane.xlu0 %1626 }
 0x5f6   : > { %2886 = vrcp.f32 %v1627_v52 }
 0x5f8   : > { %v2885_v51 = vpop.eup %2884 }
 0x5f9   : > { %v1515_v53 = vmul.f32 %v2885_v51, %v2877_v33  ;;  %v2520_v51 = vld [vmem:[%s3714_s6] ss:$0 sm:$0xff] }
 0x5fb   : > { %v1516_v54 = vpack.c.bf16 %v1515_v53, %v1515_v53 }
 0x5fd   : > { %2656 = vmatmul.mubr.msk.bf16.vlgmr.msra.gmra.mrb[4].mxu0 %vm1456_vm5, %v1516_v54 }
 0x5fe   : > { %2667 = vmatprep.mubr.msk.bf16.mxu0 %vm2998_vm4, %v2997_v29 }
 0x600   : > { %v2887_v46 = vpop.eup %2886 }
 0x601   : > { %v1629_v56 = vmul.f32 %v2887_v46, %v2879_v35 }
 0x603   : > { %v1630_v59 = vpack.c.bf16 %v1629_v56, %v1629_v56  ;;  %v2870_v56 = vld [vmem:[%s3252_s29] sm:$0xff]  }
 0x605   : > { %v1863_v55 = vpop.xlane.xlu0 %1862 }
 0x609   : > { %v1632_v57 = vpop.permute.xlu0 %1631 }
 0x60a   : > { %v1637_v58 = vsel %vm1522_vm7, %v1632_v57, 0  ;;  %v2871_v57 = vld [vmem:[%s3252_s29 + $0x8] sm:$0xff]  }
 0x60b   : > { %2666 = vmatpush3.bf16.msra.mxu0 %v1637_v58  ;;  %v2872_v58 = vld [vmem:[%s3252_s29 + $0x10] sm:$0xff]  }
 0x60c   : > { %2677 = vmatprep.subr.bf16.mxu0 %v2997_v29 }
 0x60e   : > { %2668 = vmatmul.mubr.msk.bf16.vlgmr.msra.gmra.mrb[8].mxu0 %vm1456_vm5, %v1630_v59  ;;  %v2873_v59 = vld [vmem:[%s3252_s29 + $0x18] sm:$0xff]  }
 0x60f   : > { %2679 = vmatprep.mubr.msk.bf16.mxu0 %vm2998_vm4, %v2997_v29 }
 0x622   : > { %v1745_v60 = vpop.xlane.xlu1 %1744 }
 0x623   : > { %2888 = vrcp.f32 %v1745_v60  ;;  %v2522_v60 = vld [vmem:[%s796_s26] ss:$0 sm:$0xff] }
 0x624   : > { %2890 = vrcp.f32 %v1863_v55 }
 0x626   : > { %v1750_v61 = vpop.permute.xlu1 %1749 }
 0x627   : > { %v1755_v62 = vsel %vm1522_vm7, %v1750_v61, 0 }
 0x628   : > { %2678 = vmatpush3.bf16.msra.mxu0 %v1755_v62 }
 0x629   : > { %2689 = vmatprep.subr.bf16.mxu0 %v2997_v29 }
 0x62a   : > { %v1868_v1 = vpop.permute.xlu1 %1867 }
 0x62b   : > { %v1873_v4 = vsel %vm1522_vm7, %v1868_v1, 0 }
 0x62d   : > { %v2889_v63 = vpop.eup %2888 }
 0x62e   : > { %v1747_v0 = vmul.f32 %v2889_v63, %v2883_v45  ;;  %v2891_v3 = vpop.eup %2890  ;;  %v2868_v45 = vld [vmem:[%s3238_s28] sm:$0xff]  }
 0x62f   : > { %v1865_v5 = vmul.f32 %v2891_v3, %v2881_v40 }
 0x630   : > { %v1748_v2 = vpack.c.bf16 %v1747_v0, %v1747_v0 }
 0x631   : > { %v1866_v6 = vpack.c.bf16 %v1865_v5, %v1865_v5 }
 0x632   : > { %2680 = vmatmul.mubr.msk.bf16.vlgmr.msra.gmra.mrb[12].mxu0 %vm1456_vm5, %v1748_v2 }
 0x633   : > { %2690 = vmatpush3.bf16.msra.mxu0 %v1873_v4  ;;  %2691 = vmatprep.mubr.msk.bf16.mxu0 %vm2998_vm4, %v2997_v29 }
 0x634   : > { %2703 = vmatprep.subr.bf16.mxu0 %v2997_v29 }
 0x63a   : > { %2692 = vmatmul.mubr.msk.bf16.vlgmr.msra.gmra.mrb[16].mxu0 %vm1456_vm5, %v1866_v6 }
 0x63b   : > { %2707 = vmatprep.mubr.msk.bf16.mxu0 %vm2998_vm4, %v2997_v29  ;;  %2704 = vmatpush3.bf16.msra.mxu0 %v2868_v45 }
 0x63c   : > { %2705 = vmatprep.subr.bf16.mxu0 %v2997_v29 }
 0x6d0   : > { %v1560_v7 = vpop.f32.mrb[4].mxu0 }
 0x6d1   : > { %1566 = vst.msk [vmem:[#allocation3] sm:$0xff] %vm1456_vm5, %v1560_v7  ;;  %v2657_v8 = vpop.f32.mrb[5].mxu0 }
 0x6d2   : > { %v1563_v9 = vpop.f32.mrb[6].mxu0 }
 0x6d3   : > { %v2658_v10 = vpop.f32.mrb[7].mxu0 }
 0x6e1   : > { %v1673_v11 = vpop.f32.mrb[8].mxu0 }
 0x6e2   : > { %1680 = vrot.lane.b32.xlu0 %v1673_v11, %s3010_s20  ;;  %v2669_v12 = vpop.f32.mrb[9].mxu0  ;;  %s3716_s20 = sld [smem:[#allocation10_spill]] }
 0x6e3   : > { %v1676_v13 = vpop.f32.mrb[10].mxu0 }
 0x6e4   : > { %v2670_v14 = vpop.f32.mrb[11].mxu0 }
 0x6e8   : > { %p2532_p1 = scmp.ne.s32.totalorder %s3716_s20, 1 }
 0x6e9   : > { %s3718_s23 = sld [smem:[#allocation29_spill]] (!%p2532_p1) }
 0x705   : > { %v1791_v17 = vpop.f32.mrb[12].mxu0 }
 0x706   : > { %1798 = vrot.lane.b32.xlu1 %v1791_v17, %s3011_s3  ;;  %v2681_v18 = vpop.f32.mrb[13].mxu0  ;;  %s3717_s3 = sld [smem:[#allocation28_spill]] (!%p2532_p1) }
 0x707   : > { %v1794_v19 = vpop.f32.mrb[14].mxu0 }
 0x708   : > { %v2682_v20 = vpop.f32.mrb[15].mxu0 }
 0x70d   : > { %v1909_v22 = vpop.f32.mrb[16].mxu0 }
 0x70e   : > { %1916 = vrot.lane.b32.xlu0 %v1909_v22, %s3012_s9  ;;  %v2693_v23 = vpop.f32.mrb[17].mxu0  ;;  %v3013_v22 = vmov -1.0  }
 0x70f   : > { %v1912_v24 = vpop.f32.mrb[18].mxu0 }
 0x710   : > { %v2694_v25 = vpop.f32.mrb[19].mxu0 }
 0x754   : > { %v1681_v26 = vpop.permute.xlu0 %1680 }
 0x755   : > { %1684 = vst.msk [vmem:[#allocation3] sm:$0xff] %vm1683_vm8, %v1681_v26 }
 0x778   : > { %v1799_v27 = vpop.permute.xlu1 %1798 }
 0x779   : > { %1802 = vst.msk [vmem:[#allocation3] sm:$0xff] %vm1801_vm9, %v1799_v27 }
 0x780   : > { %v1917_v28 = vpop.permute.xlu0 %1916 }
 0x781   : > { %1920 = vst.msk [vmem:[#allocation3] sm:$0xff] %vm1919_vm10, %v1917_v28 }
 0x788   : > { %v1921_v30 = vld [vmem:[#allocation3] sm:$0xff] }
 0x789   : > { %v1922_v31 = vpack.c.bf16 %v1921_v30, %v1921_v30  ;;  %v2526_v30 = vld [vmem:[%s804_s19] ss:$0 sm:$0xff] }
 0x78b   : > { %2700 = vmatmul.mubr.msk.bf16.vlgmr.msra.gmra.mrb[16].mxu1 %vm1356_vm3, %v1922_v31 }
 0x78c   : > { %2719 = vmatprep.mubr.msk.bf16.mxu1 %vm2998_vm4, %v2997_v29  ;;  %2712 = vmatpush3.bf16.msra.mxu1 %v2870_v56 }
 0x78d   : > { %2713 = vmatprep.subr.bf16.mxu1 %v2997_v29 }
 0x790   : > { %2714 = vmatpush3.bf16.msra.mxu1 %v2871_v57 }
 0x791   : > { %2715 = vmatprep.subr.bf16.mxu1 %v2997_v29 }
 0x794   : > { %2716 = vmatpush3.bf16.msra.mxu1 %v2872_v58 }
 0x795   : > { %2717 = vmatprep.subr.bf16.mxu1 %v2997_v29 }
 0x798   : > { %2718 = vmatpush3.bf16.msra.mxu1 %v2873_v59 }
 0x85e   : > { %v1983_v33 = vpop.f32.mrb[16].mxu1 }
 0x85f   : > { %v1984_v34 = vadd.f32 %v2516_v32, %v1983_v33  ;;  %v2701_v35 = vpop.f32.mrb[17].mxu1 }
 0x860   : > { %v1986_v36 = vpop.f32.mrb[18].mxu1 }
 0x861   : > { %v3529_v37 = vadd.f32 %v1984_v34, %v3415_v21  ;;  %v2702_v38 = vpop.f32.mrb[19].mxu1  ;;  %v2869_v21 = vld [vmem:[%s3238_s28 + $0x8] sm:$0xff]   ;;  %s3715_s28 = scalar_lea.vmem %s3647_s12, %s3193_s0 }
 0x862   : > { %2706 = vmatpush3.bf16.msra.mxu0 %v2869_v21  ;;  %v2521_v53 = vld [vmem:[%s3715_s28] ss:$0 sm:$0xff] }
 0x863   : > { %v1992_v39 = vsel %vm1356_vm3, %v3529_v37, 0.0 }
 0x864   : > { %1993 = vadd.xlane.f32.xlu1 %v1992_v39 }
 0x8f1   : > { %v1994_v40 = vpop.xlane.xlu1 %1993 }
 0x8f2   : > { %v1995_v41 = vmul.f32 0.03125, %v1994_v40 }
 0x8f4   : > { %v1996_v42 = vsub.f32 %v3529_v37, %v1995_v41 }
 0x8f6   : > { %v1997_v43 = vmul.f32 %v1996_v42, %v1996_v42 }
 0x8f8   : > { %v1998_v44 = vsel %vm1356_vm3, %v1997_v43, 0.0 }
 0x8f9   : > { %1999 = vadd.xlane.f32.xlu0 %v1998_v44 }
 0x986   : > { %v2000_v47 = vpop.xlane.xlu0 %1999 }
 0x987   : > { %v2001_v48 = vmul.f32 0.03125, %v2000_v47  ;;  %v2533_v47 = vld [vmem:[%s3717_s3] ss:$0 sm:$0xff] (!%p2532_p1) }
 0x989   : > { %v2002_v49 = vadd.f32 1e-12, %v2001_v48 }
 0x98b   : > { %2892 = vrsqrt.f32 %v2002_v49  ;;  %v2534_v49 = vld [vmem:[%s3718_s23] ss:$0 sm:$0xff] (!%p2532_p1) }
 0x995   : > { %v2893_v50 = vpop.eup %2892 }
 0x996   : > { %v2004_v52 = vmul.f32 %v2893_v50, %v1996_v42 }
 0x998   : > { %v2011_v54 = vmul.f32 %v2520_v51, %v2004_v52 }
 0x99a   : > { %v2018_v46 = vadd.f32 %v2521_v53, %v2011_v54 }
 0x99c   : > { %v2019_v55 = vpack.c.bf16 %v2018_v46, %v2018_v46 }
 0x99e   : > { %2708 = vmatmul.mubr.msk.bf16.vlgmr.msra.gmra.mrb[20].mxu0 %vm1356_vm3, %v2019_v55 }
 0xa71   : > { %v2080_v61 = vpop.f32.mrb[20].mxu0 }
 0xa72   : > { %v2081_v62 = vadd.f32 %v2522_v60, %v2080_v61  ;;  %v2709_v63 = vpop.f32.mrb[21].mxu0 }
 0xa73   : > { %v2083_v0 = vpop.f32.mrb[22].mxu0 }
 0xa74   : > { %v2087_v1 = vmul.f32 0.70710677, %v2081_v62  ;;  %v2710_v2 = vpop.f32.mrb[23].mxu0  ;;  %v2086_v25 = vmul.f32 0.5, %v2081_v62 }
 0xa76   : > { %v2090_v3 = vand.u32 2147483647, %v2087_v1  ;;  %vm2088_vm11 = vcmp.ge.f32.partialorder %v2087_v1, 0.0 }
 0xa77   : > { %v2089_v23 = vsel %vm2088_vm11, 1.0, %v3013_v22 }
 0xa78   : > { %v2091_v4 = vmul.f32 0.3275911, %v2090_v3  ;;  %v2104_v6 = vsub.f32 0.0, %v2090_v3 }
 0xa7a   : > { %v2092_v5 = vadd.f32 1.0, %v2091_v4  ;;  %v2105_v29 = vmul.f32 %v2104_v6, %v2090_v3 }
 0xa7c   : > { %2894 = vrcp.f32 %v2092_v5  ;;  %v2106_v10 = vmul.f32 1.442695, %v2105_v29 }
 0xa7e   : > { %2896 = vpow2.f32 %v2106_v10 }
 0xa86   : > { %v2895_v7 = vpop.eup %2894 }
 0xa87   : > { %v2095_v8 = vmul.f32 1.0614054, %v2895_v7 }
 0xa88   : > { %v2897_v18 = vpop.eup %2896 }
 0xa89   : > { %v2096_v9 = vadd.f32 -1.4531521, %v2095_v8 }
 0xa8b   : > { %v2097_v11 = vmul.f32 %v2895_v7, %v2096_v9 }
 0xa8d   : > { %v2098_v12 = vadd.f32 1.4214138, %v2097_v11 }
 0xa8f   : > { %v2099_v13 = vmul.f32 %v2895_v7, %v2098_v12 }
 0xa91   : > { %v2100_v14 = vadd.f32 -0.28449672, %v2099_v13 }
 0xa93   : > { %v2101_v15 = vmul.f32 %v2895_v7, %v2100_v14 }
 0xa95   : > { %v2102_v16 = vadd.f32 0.2548296, %v2101_v15 }
 0xa97   : > { %v2103_v17 = vmul.f32 %v2895_v7, %v2102_v16 }
 0xa99   : > { %v2108_v19 = vmul.f32 %v2897_v18, %v2103_v17 }
 0xa9b   : > { %v2109_v20 = vsub.f32 1.0, %v2108_v19 }
 0xa9d   : > { %v2110_v24 = vmul.f32 %v2109_v20, %v2089_v23 }
 0xa9f   : > { %v2111_v26 = vadd.f32 1.0, %v2110_v24 }
 0xaa1   : > { %v2112_v27 = vmul.f32 %v2111_v26, %v2086_v25 }
 0xaa3   : > { %v2113_v28 = vpack.c.bf16 %v2112_v27, %v2112_v27 }
 0xaa5   : > { %2720 = vmatmul.mubr.msk.bf16.vlgmr.msra.gmra.mrb[20].mxu1 %vm2153_vm12, %v2113_v28 }
 0xb77   : > { %2202 = sbr.rel (%p2532_p1) target bundleno = 3255 (0xcb7), region = 104 }
 0xb78   : > { %v2191_v31 = vpop.f32.mrb[20].mxu1 }
 0xb79   : > { %v2192_v32 = vadd.f32 %v2526_v30, %v2191_v31  ;;  %v2721_v33 = vpop.f32.mrb[21].mxu1 }
 0xb7a   : > { %v2194_v34 = vpop.f32.mrb[22].mxu1 }
 0xb7b   : > { %v2197_v35 = vadd.f32 %v2192_v32, %v3529_v37  ;;  %v2722_v36 = vpop.f32.mrb[23].mxu1 }
 0xb7d   : > { %2198 = vst.msk [vmem:[#allocation2] sm:$0xff] %vm1356_vm3, %v2197_v35  ;;  %v2205_v38 = vsel (!%p2532_p1), %vm1356_vm3, %v2197_v35, 0.0 }
 0xb7e   : > { %2206 = vadd.xlane.f32.xlu0 %v2205_v38 }
 0xc0b   : > { %v2207_v39 = vpop.xlane.xlu0 %2206 }
 0xc0c   : > { %v2208_v40 = vmul.f32 0.03125, %v2207_v39 }
 0xc0e   : > { %v2209_v41 = vsub.f32 %v2197_v35, %v2208_v40 }
 0xc10   : > { %v2210_v42 = vmul.f32 %v2209_v41, %v2209_v41 }
 0xc12   : > { %v2211_v43 = vsel %vm1356_vm3, %v2210_v42, 0.0 }
 0xc13   : > { %2212 = vadd.xlane.f32.xlu0 %v2211_v43 }
 0xca0   : > { %v2213_v44 = vpop.xlane.xlu0 %2212 }
 0xca1   : > { %v2214_v45 = vmul.f32 0.03125, %v2213_v44 }
 0xca3   : > { %v2215_v37 = vadd.f32 1e-12, %v2214_v45 }
 0xca5   : > { %2898 = vrsqrt.f32 %v2215_v37 }
 0xcaf   : > { %v2899_v21 = vpop.eup %2898 }
 0xcb0   : > { %v2217_v48 = vmul.f32 %v2899_v21, %v2209_v41 }
 0xcb2   : > { %v2224_v50 = vmul.f32 %v2533_v47, %v2217_v48 }
 0xcb4   : > { %v2231_v51 = vadd.f32 %v2534_v49, %v2224_v50 }
 0xcb6   : > { %2232 = vst.msk [vmem:[%s755_s17] sm:$0xff] %vm1356_vm3, %v2231_v51 }
 0xcb7 PF: > { %s3719_s27 = sld [smem:[#allocation11_spill]]  ;;  %s3720_s4 = sld [smem:[#allocation8_spill]] }
 0xcb8   : > { %s3722_s28 = sld [smem:[#allocation30_spill]]  ;;  %s2247_s24 = sshll.u32 %s755_s17, 4  ;;  %s2248_s24 = int_to_ptr.vmem [resolvable:$true] %s2247_s24 }
 0xcb9   : > { %s2900_s20 = scalar_lea.vmem %s2248_s24, 128  ;;  %s3014_s0 = smov [#allocation4]  }
 0xcba   : > { %p2901_p2 = scmp.ne.s32.totalorder %s2248_s24, %s2900_s20  ;;  %s2904_s19 = sshll.u32 %s3014_s0, 4  ;;  %s2905_s19 = int_to_ptr.vmem [resolvable:$false] %s2904_s19 }
 0xcbb   : > { %s2906_s3 = scalar_lea.vmem %s2905_s19, 256  ;;  %p2907_p6 = scmp.lt.s32.totalorder %s2248_s24, %s2905_s19 }
 0xcbc   : > { %p2902_p4 = pnand %p2901_p2, %p3164_p3  ;;  %p2908_p7 = scmp.lt.s32.totalorder %s2906_s3, %s2900_s20 }
 0xcbd   : > { %s2536_s6 = sshll.u32 %s3719_s27, 7  ;;  %s3723_s26 = sand.u32 1, %s3720_s4  }
 0xcbe   : > { %s3584_s21 = scalar_lea.hbm %s3722_s28, %s2536_s6  ;;  %s2234_s29 = scalar_lea.sflag [#allocation5], %s3723_s26 }
 0xcbf   : > { %p2903_p5 = pneg %p2902_p4  ;;  %p2909_p8 = por %p2908_p7, %p2907_p6 }
 0xcc1   : > { %p2910_p10 = pnand %p2909_p8, %p2903_p5 }
 0xcc3   : > { %2913 = shalt.err (!%p2910_p10)
}
 0xcc4   : > { %s2914_s22 = scalar_lea.hbm %s3584_s21, 128  ;;  %s2918_s2 = scalar_lea.hbm %s3722_s28, 256 }
 0xcc5   : > { %p2915_p11 = scmp.ne.s32.totalorder %s3584_s21, %s2914_s22  ;;  %p2919_p0 = scmp.lt.u32.totalorder %s3584_s21, %s3722_s28 }
 0xcc6   : > { %p2920_p1 = scmp.lt.u32.totalorder %s2918_s2, %s2914_s22  ;;  %p2922_p4 = scmp.lt.u32.totalorder %s2914_s22, %s3584_s21 }
 0xcc7   : > { %p2916_p12 = pnand %p2915_p11, %p3164_p3 }
 0xcc8   : > { %p2921_p2 = por %p2920_p1, %p2919_p0 }
 0xcc9   : > { %p2917_p13 = pneg %p2916_p12 }
 0xcca   : > { %p2923_p5 = por %p2922_p4, %p2921_p2 }
 0xccc   : > { %p2924_p6 = pnand %p2923_p5, %p2917_p13 }
 0xcce   : > { %2927 = shalt.err (!%p2924_p6)
}
 0xccf   : > { %2724 = dma.vmem_to_hbm [thread:$0]  (%p3164_p3), %s2248_s24, 128, %s3584_s21, %s2234_s29  }
 0xcd0 PF: > { %s3724_s4 = sld [smem:[#allocation14_spill]]  ;;  %s3725_s6 = sld [smem:[#allocation7_spill]] }
 0xcd6   : > { %p2730_p7 = scmp.ge.s32.totalorder %s3724_s4, 2  ;;  %s2259_s1 = sand.u32 1, %s3725_s6  }
 0xcd7   : > { %s2260_s26 = scalar_lea.sflag [#allocation5], %s2259_s1 }
 0xcd8   : > { %p2727_p8 = pnand %p2730_p7, %p3174_p9 }
 0xcda   : > { %2961 = dma.done.wait (!%p2727_p8), %s2260_s26, 128  }
 0xcdb   : > { %2963 = vsyncadd (!%p2727_p8), %s2260_s26, 4294967168  ;;  %s32_s23 = sadd.s32 1, %s3724_s4   ;;  %s3727_s0 = sld [smem:[#allocation8_spill]] }
 0xcdc   : > { %p29_p10 = scmp.ge.s32.totalorder %s32_s23, 6   ;;  %s3728_s30 = sld [smem:[#allocation9_spill]] }
 0xcdd   : > { %s3729_s20 = sld [smem:[#allocation19_spill]]  ;;  %s3730_s21 = sld [smem:[#allocation12_spill]] }
 0xcde   : > { %s3731_s1 = sld [smem:[#allocation13_spill]]  ;;  %s3732_s22 = sld [smem:[#allocation15_spill]] }
 0xcdf   : > { %s3733_s2 = sld [smem:[#allocation17_spill]]  ;;  %31 = sbr.rel (!%p29_p10) target bundleno = 17 (0x11), region = 175 }
 0xce6   :  { %2265 = vsyncpa [#allocation5], 1 }
 0xce7   :  { %2267 = vsyncpa [#allocation5 + $0x1], 1 }

</bundles_post_ra>
